<compile_context>
chip_gen: v7x
topology: tpu7x:2x2x1
jax: 0.10.0
libtpu: 0.0.40
codegen_flags: <defaults>
</compile_context>

<pallas_src>
import numpy as np
import jax
import jax.numpy as jnp
from jax.experimental import pallas as pl
from jax.experimental.pallas import tpu as pltpu


def _pool_matrices(h, w):
    """Constant matrices implementing AvgPool2d(2,2): pooled = (0.5*Ph) @ slab @ (0.5*Pw)."""
    ho, wo = h // 2, w // 2
    ph = np.zeros((ho, h), np.float32)          # (Ho, H): averages row pairs
    ph[np.arange(ho), 2 * np.arange(ho)] = 0.5
    ph[np.arange(ho), 2 * np.arange(ho) + 1] = 0.5
    pw = np.zeros((w, wo), np.float32)          # (W, Wo): averages column pairs
    pw[2 * np.arange(wo), np.arange(wo)] = 0.5
    pw[2 * np.arange(wo) + 1, np.arange(wo)] = 0.5
    return ph, pw


def transition_kernel(x_ref, ph_ref, pw_ref, w_ref, b_ref, o_ref):
    """Fused AvgPool2d(2,2) + Conv2d 1x1 (order swapped — mathematically identical).

    x_ref : (N, Cin, H, W)    VMEM   input, PyTorch NCHW layout
    ph_ref: (Ho, H)           VMEM   constant 0/0.5 row-pair-average matrix
    pw_ref: (W, Wo)           VMEM   constant 0/0.5 col-pair-average matrix
    w_ref : (Cout, Cin)       SMEM   1x1-conv weights (read as scalars)
    b_ref : (Cout,)           SMEM   bias (read as scalars)
    o_ref : (N, Cout, Ho, Wo) VMEM   output, PyTorch NCHW layout
    """
    n, cin, _, _ = x_ref.shape
    cout = o_ref.shape[1]

    ph = ph_ref[...]                              # (Ho, H)
    pw = pw_ref[...]                              # (W, Wo)

    # Hoist every weight/bias scalar out of the loops (one SMEM read each).
    wv = [[w_ref[co, ci] for ci in range(cin)] for co in range(cout)]
    bv = [b_ref[co] for co in range(cout)]

    for ni in range(n):
        # --- AvgPool2d(2,2) per input channel, on the MXU (f32-accurate path) ---
        pooled = []
        for ci in range(cin):
            slab = x_ref[ni, ci, :, :]                               # (H, W)
            rows = jnp.dot(ph, slab,
                           preferred_element_type=jnp.float32,
                           precision=jax.lax.Precision.HIGHEST)      # (Ho, W)
            pooled.append(jnp.dot(rows, pw,
                                  preferred_element_type=jnp.float32,
                                  precision=jax.lax.Precision.HIGHEST))  # (Ho, Wo)

        # --- Conv2d 1x1 == per-pixel channel mix; tiny, so scalar MACs on the VPU ---
        for co in range(cout):
            y = pooled[0] * wv[co][0]
            for ci in range(1, cin):
                y = y + pooled[ci] * wv[co][ci]
            o_ref[ni, co, :, :] = y + bv[co]


@jax.jit
def transition_forward(x_nchw, w_oihw, b):
    """PyTorch-layout wrapper: x (N,Cin,H,W), w (Cout,Cin,1,1), b (Cout,) -> (N,Cout,H/2,W/2)."""
    n, cin, h, w = x_nchw.shape
    cout = w_oihw.shape[0]
    ho, wo = h // 2, w // 2

    ph_np, pw_np = _pool_matrices(h, w)           # trace-time numpy -> baked constants
    ph = jnp.asarray(ph_np)
    pw = jnp.asarray(pw_np)

    x = x_nchw.astype(jnp.float32)                               # no-op for f32 inputs
    w2d = w_oihw.reshape(cout, cin).astype(jnp.float32)          # only wrapper data op (32 floats)
    b1d = b.astype(jnp.float32)

    return pl.pallas_call(
        transition_kernel,
        out_shape=jax.ShapeDtypeStruct((n, cout, ho, wo), jnp.float32),
        in_specs=[
            pl.BlockSpec(memory_space=pltpu.MemorySpace.VMEM),   # x   (N,Cin,H,W)
            pl.BlockSpec(memory_space=pltpu.MemorySpace.VMEM),   # Ph  (Ho,H)
            pl.BlockSpec(memory_space=pltpu.MemorySpace.VMEM),   # Pw  (W,Wo)
            pl.BlockSpec(memory_space=pltpu.MemorySpace.SMEM),   # w   (Cout,Cin) scalars
            pl.BlockSpec(memory_space=pltpu.MemorySpace.SMEM),   # b   (Cout,)    scalars
        ],
        out_specs=pl.BlockSpec(memory_space=pltpu.MemorySpace.VMEM),
    )(x, ph, pw, w2d, b1d)


# ---------------- pure-JAX reference (module order: conv then pool) ----------------
def _transition_ref(x_nchw, w_oihw, b):
    y = jax.lax.conv_general_dilated(
        x_nchw, w_oihw, window_strides=(1, 1), padding='VALID',
        dimension_numbers=('NCHW', 'OIHW', 'NCHW')) + b.reshape(1, -1, 1, 1)
    y = jax.lax.reduce_window(y, 0.0, jax.lax.add,
                              window_dimensions=(1, 1, 2, 2),
                              window_strides=(1, 1, 2, 2),
                              padding='VALID') * 0.25
    return y


if __name__ == "__main__":
    key = jax.random.PRNGKey(0)
    kx, kw, kb = jax.random.split(key, 3)

    # transition(tl_feature_map=4, tl_output_feature_map=8) on a (2, 4, 16, 16) input.
    N, CIN, H, W = 2, 4, 16, 16
    COUT = 8

    x = jax.random.normal(kx, (N, CIN, H, W), jnp.float32)
    bound = 1.0 / (CIN ** 0.5)                               # PyTorch Conv2d default init
    w = jax.random.uniform(kw, (COUT, CIN, 1, 1), jnp.float32, -bound, bound)
    b = jax.random.uniform(kb, (COUT,), jnp.float32, -bound, bound)

    with jax.default_matmul_precision("highest"):
        out = jax.block_until_ready(transition_forward(x, w, b))
        ref = jax.block_until_ready(_transition_ref(x, w, b))

    assert out.shape == (N, COUT, H // 2, W // 2), out.shape
    assert bool(jnp.all(jnp.isfinite(out)))
    assert bool(jnp.allclose(out, ref, atol=1e-4, rtol=1e-4)), (
        float(jnp.max(jnp.abs(out - ref))))

    print("KERNEL_OK")
</pallas_src>

<mosaic_0001>
module attributes {stable_mosaic.version = 11 : i64} {
  func.func @transition_kernel(%arg0: memref<2x4x16x16xf32, #tpu.memory_space<vmem>>, %arg1: memref<8x16xf32, #tpu.memory_space<vmem>>, %arg2: memref<16x8xf32, #tpu.memory_space<vmem>>, %arg3: memref<8x4xf32, #tpu.memory_space<smem>>, %arg4: memref<8xf32, #tpu.memory_space<smem>>, %arg5: memref<2x8x8x8xf32, #tpu.memory_space<vmem>>) attributes {dimension_semantics = [], scalar_prefetch = 0 : i64, scratch_operands = 0 : i64, tpu.core_type = #tpu.core_type<tc>} {
    %c0 = arith.constant 0 : index
    %c0_0 = arith.constant 0 : index
    %0 = vector.load %arg1[%c0, %c0_0] : memref<8x16xf32, #tpu.memory_space<vmem>>, vector<8x16xf32>
    %c0_1 = arith.constant 0 : index
    %c0_2 = arith.constant 0 : index
    %1 = vector.load %arg2[%c0_1, %c0_2] : memref<16x8xf32, #tpu.memory_space<vmem>>, vector<16x8xf32>
    %c0_3 = arith.constant 0 : index
    %c0_4 = arith.constant 0 : index
    %2 = memref.load %arg3[%c0_3, %c0_4] : memref<8x4xf32, #tpu.memory_space<smem>>
    %c0_5 = arith.constant 0 : index
    %c1 = arith.constant 1 : index
    %3 = memref.load %arg3[%c0_5, %c1] : memref<8x4xf32, #tpu.memory_space<smem>>
    %c0_6 = arith.constant 0 : index
    %c2 = arith.constant 2 : index
    %4 = memref.load %arg3[%c0_6, %c2] : memref<8x4xf32, #tpu.memory_space<smem>>
    %c0_7 = arith.constant 0 : index
    %c3 = arith.constant 3 : index
    %5 = memref.load %arg3[%c0_7, %c3] : memref<8x4xf32, #tpu.memory_space<smem>>
    %c1_8 = arith.constant 1 : index
    %c0_9 = arith.constant 0 : index
    %6 = memref.load %arg3[%c1_8, %c0_9] : memref<8x4xf32, #tpu.memory_space<smem>>
    %c1_10 = arith.constant 1 : index
    %c1_11 = arith.constant 1 : index
    %7 = memref.load %arg3[%c1_10, %c1_11] : memref<8x4xf32, #tpu.memory_space<smem>>
    %c1_12 = arith.constant 1 : index
    %c2_13 = arith.constant 2 : index
    %8 = memref.load %arg3[%c1_12, %c2_13] : memref<8x4xf32, #tpu.memory_space<smem>>
    %c1_14 = arith.constant 1 : index
    %c3_15 = arith.constant 3 : index
    %9 = memref.load %arg3[%c1_14, %c3_15] : memref<8x4xf32, #tpu.memory_space<smem>>
    %c2_16 = arith.constant 2 : index
    %c0_17 = arith.constant 0 : index
    %10 = memref.load %arg3[%c2_16, %c0_17] : memref<8x4xf32, #tpu.memory_space<smem>>
    %c2_18 = arith.constant 2 : index
    %c1_19 = arith.constant 1 : index
    %11 = memref.load %arg3[%c2_18, %c1_19] : memref<8x4xf32, #tpu.memory_space<smem>>
    %c2_20 = arith.constant 2 : index
    %c2_21 = arith.constant 2 : index
    %12 = memref.load %arg3[%c2_20, %c2_21] : memref<8x4xf32, #tpu.memory_space<smem>>
    %c2_22 = arith.constant 2 : index
    %c3_23 = arith.constant 3 : index
    %13 = memref.load %arg3[%c2_22, %c3_23] : memref<8x4xf32, #tpu.memory_space<smem>>
    %c3_24 = arith.constant 3 : index
    %c0_25 = arith.constant 0 : index
    %14 = memref.load %arg3[%c3_24, %c0_25] : memref<8x4xf32, #tpu.memory_space<smem>>
    %c3_26 = arith.constant 3 : index
    %c1_27 = arith.constant 1 : index
    %15 = memref.load %arg3[%c3_26, %c1_27] : memref<8x4xf32, #tpu.memory_space<smem>>
    %c3_28 = arith.constant 3 : index
    %c2_29 = arith.constant 2 : index
    %16 = memref.load %arg3[%c3_28, %c2_29] : memref<8x4xf32, #tpu.memory_space<smem>>
    %c3_30 = arith.constant 3 : index
    %c3_31 = arith.constant 3 : index
    %17 = memref.load %arg3[%c3_30, %c3_31] : memref<8x4xf32, #tpu.memory_space<smem>>
    %c4 = arith.constant 4 : index
    %c0_32 = arith.constant 0 : index
    %18 = memref.load %arg3[%c4, %c0_32] : memref<8x4xf32, #tpu.memory_space<smem>>
    %c4_33 = arith.constant 4 : index
    %c1_34 = arith.constant 1 : index
    %19 = memref.load %arg3[%c4_33, %c1_34] : memref<8x4xf32, #tpu.memory_space<smem>>
    %c4_35 = arith.constant 4 : index
    %c2_36 = arith.constant 2 : index
    %20 = memref.load %arg3[%c4_35, %c2_36] : memref<8x4xf32, #tpu.memory_space<smem>>
    %c4_37 = arith.constant 4 : index
    %c3_38 = arith.constant 3 : index
    %21 = memref.load %arg3[%c4_37, %c3_38] : memref<8x4xf32, #tpu.memory_space<smem>>
    %c5 = arith.constant 5 : index
    %c0_39 = arith.constant 0 : index
    %22 = memref.load %arg3[%c5, %c0_39] : memref<8x4xf32, #tpu.memory_space<smem>>
    %c5_40 = arith.constant 5 : index
    %c1_41 = arith.constant 1 : index
    %23 = memref.load %arg3[%c5_40, %c1_41] : memref<8x4xf32, #tpu.memory_space<smem>>
    %c5_42 = arith.constant 5 : index
    %c2_43 = arith.constant 2 : index
    %24 = memref.load %arg3[%c5_42, %c2_43] : memref<8x4xf32, #tpu.memory_space<smem>>
    %c5_44 = arith.constant 5 : index
    %c3_45 = arith.constant 3 : index
    %25 = memref.load %arg3[%c5_44, %c3_45] : memref<8x4xf32, #tpu.memory_space<smem>>
    %c6 = arith.constant 6 : index
    %c0_46 = arith.constant 0 : index
    %26 = memref.load %arg3[%c6, %c0_46] : memref<8x4xf32, #tpu.memory_space<smem>>
    %c6_47 = arith.constant 6 : index
    %c1_48 = arith.constant 1 : index
    %27 = memref.load %arg3[%c6_47, %c1_48] : memref<8x4xf32, #tpu.memory_space<smem>>
    %c6_49 = arith.constant 6 : index
    %c2_50 = arith.constant 2 : index
    %28 = memref.load %arg3[%c6_49, %c2_50] : memref<8x4xf32, #tpu.memory_space<smem>>
    %c6_51 = arith.constant 6 : index
    %c3_52 = arith.constant 3 : index
    %29 = memref.load %arg3[%c6_51, %c3_52] : memref<8x4xf32, #tpu.memory_space<smem>>
    %c7 = arith.constant 7 : index
    %c0_53 = arith.constant 0 : index
    %30 = memref.load %arg3[%c7, %c0_53] : memref<8x4xf32, #tpu.memory_space<smem>>
    %c7_54 = arith.constant 7 : index
    %c1_55 = arith.constant 1 : index
    %31 = memref.load %arg3[%c7_54, %c1_55] : memref<8x4xf32, #tpu.memory_space<smem>>
    %c7_56 = arith.constant 7 : index
    %c2_57 = arith.constant 2 : index
    %32 = memref.load %arg3[%c7_56, %c2_57] : memref<8x4xf32, #tpu.memory_space<smem>>
    %c7_58 = arith.constant 7 : index
    %c3_59 = arith.constant 3 : index
    %33 = memref.load %arg3[%c7_58, %c3_59] : memref<8x4xf32, #tpu.memory_space<smem>>
    %c0_60 = arith.constant 0 : index
    %34 = memref.load %arg4[%c0_60] : memref<8xf32, #tpu.memory_space<smem>>
    %c1_61 = arith.constant 1 : index
    %35 = memref.load %arg4[%c1_61] : memref<8xf32, #tpu.memory_space<smem>>
    %c2_62 = arith.constant 2 : index
    %36 = memref.load %arg4[%c2_62] : memref<8xf32, #tpu.memory_space<smem>>
    %c3_63 = arith.constant 3 : index
    %37 = memref.load %arg4[%c3_63] : memref<8xf32, #tpu.memory_space<smem>>
    %c4_64 = arith.constant 4 : index
    %38 = memref.load %arg4[%c4_64] : memref<8xf32, #tpu.memory_space<smem>>
    %c5_65 = arith.constant 5 : index
    %39 = memref.load %arg4[%c5_65] : memref<8xf32, #tpu.memory_space<smem>>
    %c6_66 = arith.constant 6 : index
    %40 = memref.load %arg4[%c6_66] : memref<8xf32, #tpu.memory_space<smem>>
    %c7_67 = arith.constant 7 : index
    %41 = memref.load %arg4[%c7_67] : memref<8xf32, #tpu.memory_space<smem>>
    %c0_68 = arith.constant 0 : index
    %c0_69 = arith.constant 0 : index
    %c0_70 = arith.constant 0 : index
    %c0_71 = arith.constant 0 : index
    %42 = vector.load %arg0[%c0_68, %c0_69, %c0_70, %c0_71] : memref<2x4x16x16xf32, #tpu.memory_space<vmem>>, vector<1x1x16x16xf32>
    %43 = vector.shape_cast %42 : vector<1x1x16x16xf32> to vector<16x16xf32>
    %cst = arith.constant dense<0.000000e+00> : vector<8x16xf32>
    %44 = tpu.matmul %0, %43, %cst {dimension_numbers = #tpu.dot_dimension_numbers<[1], [0], [0], [1], [0, 0, 1, 1], [], []>, precision = #tpu.contract_precision<fp32>} : vector<8x16xf32>, vector<16x16xf32>, vector<8x16xf32> -> vector<8x16xf32>
    %cst_72 = arith.constant dense<0.000000e+00> : vector<8x8xf32>
    %45 = tpu.matmul %44, %1, %cst_72 {dimension_numbers = #tpu.dot_dimension_numbers<[1], [0], [0], [1], [0, 0, 1, 1], [], []>, precision = #tpu.contract_precision<fp32>} : vector<8x16xf32>, vector<16x8xf32>, vector<8x8xf32> -> vector<8x8xf32>
    %c0_73 = arith.constant 0 : index
    %c1_74 = arith.constant 1 : index
    %c0_75 = arith.constant 0 : index
    %c0_76 = arith.constant 0 : index
    %46 = vector.load %arg0[%c0_73, %c1_74, %c0_75, %c0_76] : memref<2x4x16x16xf32, #tpu.memory_space<vmem>>, vector<1x1x16x16xf32>
    %47 = vector.shape_cast %46 : vector<1x1x16x16xf32> to vector<16x16xf32>
    %cst_77 = arith.constant dense<0.000000e+00> : vector<8x16xf32>
    %48 = tpu.matmul %0, %47, %cst_77 {dimension_numbers = #tpu.dot_dimension_numbers<[1], [0], [0], [1], [0, 0, 1, 1], [], []>, precision = #tpu.contract_precision<fp32>} : vector<8x16xf32>, vector<16x16xf32>, vector<8x16xf32> -> vector<8x16xf32>
    %cst_78 = arith.constant dense<0.000000e+00> : vector<8x8xf32>
    %49 = tpu.matmul %48, %1, %cst_78 {dimension_numbers = #tpu.dot_dimension_numbers<[1], [0], [0], [1], [0, 0, 1, 1], [], []>, precision = #tpu.contract_precision<fp32>} : vector<8x16xf32>, vector<16x8xf32>, vector<8x8xf32> -> vector<8x8xf32>
    %c0_79 = arith.constant 0 : index
    %c2_80 = arith.constant 2 : index
    %c0_81 = arith.constant 0 : index
    %c0_82 = arith.constant 0 : index
    %50 = vector.load %arg0[%c0_79, %c2_80, %c0_81, %c0_82] : memref<2x4x16x16xf32, #tpu.memory_space<vmem>>, vector<1x1x16x16xf32>
    %51 = vector.shape_cast %50 : vector<1x1x16x16xf32> to vector<16x16xf32>
    %cst_83 = arith.constant dense<0.000000e+00> : vector<8x16xf32>
    %52 = tpu.matmul %0, %51, %cst_83 {dimension_numbers = #tpu.dot_dimension_numbers<[1], [0], [0], [1], [0, 0, 1, 1], [], []>, precision = #tpu.contract_precision<fp32>} : vector<8x16xf32>, vector<16x16xf32>, vector<8x16xf32> -> vector<8x16xf32>
    %cst_84 = arith.constant dense<0.000000e+00> : vector<8x8xf32>
    %53 = tpu.matmul %52, %1, %cst_84 {dimension_numbers = #tpu.dot_dimension_numbers<[1], [0], [0], [1], [0, 0, 1, 1], [], []>, precision = #tpu.contract_precision<fp32>} : vector<8x16xf32>, vector<16x8xf32>, vector<8x8xf32> -> vector<8x8xf32>
    %c0_85 = arith.constant 0 : index
    %c3_86 = arith.constant 3 : index
    %c0_87 = arith.constant 0 : index
    %c0_88 = arith.constant 0 : index
    %54 = vector.load %arg0[%c0_85, %c3_86, %c0_87, %c0_88] : memref<2x4x16x16xf32, #tpu.memory_space<vmem>>, vector<1x1x16x16xf32>
    %55 = vector.shape_cast %54 : vector<1x1x16x16xf32> to vector<16x16xf32>
    %cst_89 = arith.constant dense<0.000000e+00> : vector<8x16xf32>
    %56 = tpu.matmul %0, %55, %cst_89 {dimension_numbers = #tpu.dot_dimension_numbers<[1], [0], [0], [1], [0, 0, 1, 1], [], []>, precision = #tpu.contract_precision<fp32>} : vector<8x16xf32>, vector<16x16xf32>, vector<8x16xf32> -> vector<8x16xf32>
    %cst_90 = arith.constant dense<0.000000e+00> : vector<8x8xf32>
    %57 = tpu.matmul %56, %1, %cst_90 {dimension_numbers = #tpu.dot_dimension_numbers<[1], [0], [0], [1], [0, 0, 1, 1], [], []>, precision = #tpu.contract_precision<fp32>} : vector<8x16xf32>, vector<16x8xf32>, vector<8x8xf32> -> vector<8x8xf32>
    %58 = vector.broadcast %2 : f32 to vector<8x8xf32>
    %59 = arith.mulf %45, %58 : vector<8x8xf32>
    %60 = vector.broadcast %3 : f32 to vector<8x8xf32>
    %61 = arith.mulf %49, %60 : vector<8x8xf32>
    %62 = arith.addf %59, %61 : vector<8x8xf32>
    %63 = vector.broadcast %4 : f32 to vector<8x8xf32>
    %64 = arith.mulf %53, %63 : vector<8x8xf32>
    %65 = arith.addf %62, %64 : vector<8x8xf32>
    %66 = vector.broadcast %5 : f32 to vector<8x8xf32>
    %67 = arith.mulf %57, %66 : vector<8x8xf32>
    %68 = arith.addf %65, %67 : vector<8x8xf32>
    %69 = vector.broadcast %34 : f32 to vector<8x8xf32>
    %70 = arith.addf %68, %69 : vector<8x8xf32>
    %c0_91 = arith.constant 0 : index
    %c0_92 = arith.constant 0 : index
    %c0_93 = arith.constant 0 : index
    %c0_94 = arith.constant 0 : index
    %71 = vector.load %arg5[%c0_91, %c0_92, %c0_93, %c0_94] : memref<2x8x8x8xf32, #tpu.memory_space<vmem>>, vector<1x1x8x8xf32>
    %72 = vector.shape_cast %71 : vector<1x1x8x8xf32> to vector<8x8xf32>
    %73 = vector.shape_cast %70 : vector<8x8xf32> to vector<1x1x8x8xf32>
    tpu.vector_store %arg5[%c0_91, %c0_92, %c0_93, %c0_94], %73 {strides = array<i32>} : memref<2x8x8x8xf32, #tpu.memory_space<vmem>>, vector<1x1x8x8xf32>,
    %74 = vector.broadcast %6 : f32 to vector<8x8xf32>
    %75 = arith.mulf %45, %74 : vector<8x8xf32>
    %76 = vector.broadcast %7 : f32 to vector<8x8xf32>
    %77 = arith.mulf %49, %76 : vector<8x8xf32>
    %78 = arith.addf %75, %77 : vector<8x8xf32>
    %79 = vector.broadcast %8 : f32 to vector<8x8xf32>
    %80 = arith.mulf %53, %79 : vector<8x8xf32>
    %81 = arith.addf %78, %80 : vector<8x8xf32>
    %82 = vector.broadcast %9 : f32 to vector<8x8xf32>
    %83 = arith.mulf %57, %82 : vector<8x8xf32>
    %84 = arith.addf %81, %83 : vector<8x8xf32>
    %85 = vector.broadcast %35 : f32 to vector<8x8xf32>
    %86 = arith.addf %84, %85 : vector<8x8xf32>
    %c0_95 = arith.constant 0 : index
    %c1_96 = arith.constant 1 : index
    %c0_97 = arith.constant 0 : index
    %c0_98 = arith.constant 0 : index
    %87 = vector.load %arg5[%c0_95, %c1_96, %c0_97, %c0_98] : memref<2x8x8x8xf32, #tpu.memory_space<vmem>>, vector<1x1x8x8xf32>
    %88 = vector.shape_cast %87 : vector<1x1x8x8xf32> to vector<8x8xf32>
    %89 = vector.shape_cast %86 : vector<8x8xf32> to vector<1x1x8x8xf32>
    tpu.vector_store %arg5[%c0_95, %c1_96, %c0_97, %c0_98], %89 {strides = array<i32>} : memref<2x8x8x8xf32, #tpu.memory_space<vmem>>, vector<1x1x8x8xf32>,
    %90 = vector.broadcast %10 : f32 to vector<8x8xf32>
    %91 = arith.mulf %45, %90 : vector<8x8xf32>
    %92 = vector.broadcast %11 : f32 to vector<8x8xf32>
    %93 = arith.mulf %49, %92 : vector<8x8xf32>
    %94 = arith.addf %91, %93 : vector<8x8xf32>
    %95 = vector.broadcast %12 : f32 to vector<8x8xf32>
    %96 = arith.mulf %53, %95 : vector<8x8xf32>
    %97 = arith.addf %94, %96 : vector<8x8xf32>
    %98 = vector.broadcast %13 : f32 to vector<8x8xf32>
    %99 = arith.mulf %57, %98 : vector<8x8xf32>
    %100 = arith.addf %97, %99 : vector<8x8xf32>
    %101 = vector.broadcast %36 : f32 to vector<8x8xf32>
    %102 = arith.addf %100, %101 : vector<8x8xf32>
    %c0_99 = arith.constant 0 : index
    %c2_100 = arith.constant 2 : index
    %c0_101 = arith.constant 0 : index
    %c0_102 = arith.constant 0 : index
    %103 = vector.load %arg5[%c0_99, %c2_100, %c0_101, %c0_102] : memref<2x8x8x8xf32, #tpu.memory_space<vmem>>, vector<1x1x8x8xf32>
    %104 = vector.shape_cast %103 : vector<1x1x8x8xf32> to vector<8x8xf32>
    %105 = vector.shape_cast %102 : vector<8x8xf32> to vector<1x1x8x8xf32>
    tpu.vector_store %arg5[%c0_99, %c2_100, %c0_101, %c0_102], %105 {strides = array<i32>} : memref<2x8x8x8xf32, #tpu.memory_space<vmem>>, vector<1x1x8x8xf32>,
    %106 = vector.broadcast %14 : f32 to vector<8x8xf32>
    %107 = arith.mulf %45, %106 : vector<8x8xf32>
    %108 = vector.broadcast %15 : f32 to vector<8x8xf32>
    %109 = arith.mulf %49, %108 : vector<8x8xf32>
    %110 = arith.addf %107, %109 : vector<8x8xf32>
    %111 = vector.broadcast %16 : f32 to vector<8x8xf32>
    %112 = arith.mulf %53, %111 : vector<8x8xf32>
    %113 = arith.addf %110, %112 : vector<8x8xf32>
    %114 = vector.broadcast %17 : f32 to vector<8x8xf32>
    %115 = arith.mulf %57, %114 : vector<8x8xf32>
    %116 = arith.addf %113, %115 : vector<8x8xf32>
    %117 = vector.broadcast %37 : f32 to vector<8x8xf32>
    %118 = arith.addf %116, %117 : vector<8x8xf32>
    %c0_103 = arith.constant 0 : index
    %c3_104 = arith.constant 3 : index
    %c0_105 = arith.constant 0 : index
    %c0_106 = arith.constant 0 : index
    %119 = vector.load %arg5[%c0_103, %c3_104, %c0_105, %c0_106] : memref<2x8x8x8xf32, #tpu.memory_space<vmem>>, vector<1x1x8x8xf32>
    %120 = vector.shape_cast %119 : vector<1x1x8x8xf32> to vector<8x8xf32>
    %121 = vector.shape_cast %118 : vector<8x8xf32> to vector<1x1x8x8xf32>
    tpu.vector_store %arg5[%c0_103, %c3_104, %c0_105, %c0_106], %121 {strides = array<i32>} : memref<2x8x8x8xf32, #tpu.memory_space<vmem>>, vector<1x1x8x8xf32>,
    %122 = vector.broadcast %18 : f32 to vector<8x8xf32>
    %123 = arith.mulf %45, %122 : vector<8x8xf32>
    %124 = vector.broadcast %19 : f32 to vector<8x8xf32>
    %125 = arith.mulf %49, %124 : vector<8x8xf32>
    %126 = arith.addf %123, %125 : vector<8x8xf32>
    %127 = vector.broadcast %20 : f32 to vector<8x8xf32>
    %128 = arith.mulf %53, %127 : vector<8x8xf32>
    %129 = arith.addf %126, %128 : vector<8x8xf32>
    %130 = vector.broadcast %21 : f32 to vector<8x8xf32>
    %131 = arith.mulf %57, %130 : vector<8x8xf32>
    %132 = arith.addf %129, %131 : vector<8x8xf32>
    %133 = vector.broadcast %38 : f32 to vector<8x8xf32>
    %134 = arith.addf %132, %133 : vector<8x8xf32>
    %c0_107 = arith.constant 0 : index
    %c4_108 = arith.constant 4 : index
    %c0_109 = arith.constant 0 : index
    %c0_110 = arith.constant 0 : index
    %135 = vector.load %arg5[%c0_107, %c4_108, %c0_109, %c0_110] : memref<2x8x8x8xf32, #tpu.memory_space<vmem>>, vector<1x1x8x8xf32>
    %136 = vector.shape_cast %135 : vector<1x1x8x8xf32> to vector<8x8xf32>
    %137 = vector.shape_cast %134 : vector<8x8xf32> to vector<1x1x8x8xf32>
    tpu.vector_store %arg5[%c0_107, %c4_108, %c0_109, %c0_110], %137 {strides = array<i32>} : memref<2x8x8x8xf32, #tpu.memory_space<vmem>>, vector<1x1x8x8xf32>,
    %138 = vector.broadcast %22 : f32 to vector<8x8xf32>
    %139 = arith.mulf %45, %138 : vector<8x8xf32>
    %140 = vector.broadcast %23 : f32 to vector<8x8xf32>
    %141 = arith.mulf %49, %140 : vector<8x8xf32>
    %142 = arith.addf %139, %141 : vector<8x8xf32>
    %143 = vector.broadcast %24 : f32 to vector<8x8xf32>
    %144 = arith.mulf %53, %143 : vector<8x8xf32>
    %145 = arith.addf %142, %144 : vector<8x8xf32>
    %146 = vector.broadcast %25 : f32 to vector<8x8xf32>
    %147 = arith.mulf %57, %146 : vector<8x8xf32>
    %148 = arith.addf %145, %147 : vector<8x8xf32>
    %149 = vector.broadcast %39 : f32 to vector<8x8xf32>
    %150 = arith.addf %148, %149 : vector<8x8xf32>
    %c0_111 = arith.constant 0 : index
    %c5_112 = arith.constant 5 : index
    %c0_113 = arith.constant 0 : index
    %c0_114 = arith.constant 0 : index
    %151 = vector.load %arg5[%c0_111, %c5_112, %c0_113, %c0_114] : memref<2x8x8x8xf32, #tpu.memory_space<vmem>>, vector<1x1x8x8xf32>
    %152 = vector.shape_cast %151 : vector<1x1x8x8xf32> to vector<8x8xf32>
    %153 = vector.shape_cast %150 : vector<8x8xf32> to vector<1x1x8x8xf32>
    tpu.vector_store %arg5[%c0_111, %c5_112, %c0_113, %c0_114], %153 {strides = array<i32>} : memref<2x8x8x8xf32, #tpu.memory_space<vmem>>, vector<1x1x8x8xf32>,
    %154 = vector.broadcast %26 : f32 to vector<8x8xf32>
    %155 = arith.mulf %45, %154 : vector<8x8xf32>
    %156 = vector.broadcast %27 : f32 to vector<8x8xf32>
    %157 = arith.mulf %49, %156 : vector<8x8xf32>
    %158 = arith.addf %155, %157 : vector<8x8xf32>
    %159 = vector.broadcast %28 : f32 to vector<8x8xf32>
    %160 = arith.mulf %53, %159 : vector<8x8xf32>
    %161 = arith.addf %158, %160 : vector<8x8xf32>
    %162 = vector.broadcast %29 : f32 to vector<8x8xf32>
    %163 = arith.mulf %57, %162 : vector<8x8xf32>
    %164 = arith.addf %161, %163 : vector<8x8xf32>
    %165 = vector.broadcast %40 : f32 to vector<8x8xf32>
    %166 = arith.addf %164, %165 : vector<8x8xf32>
    %c0_115 = arith.constant 0 : index
    %c6_116 = arith.constant 6 : index
    %c0_117 = arith.constant 0 : index
    %c0_118 = arith.constant 0 : index
    %167 = vector.load %arg5[%c0_115, %c6_116, %c0_117, %c0_118] : memref<2x8x8x8xf32, #tpu.memory_space<vmem>>, vector<1x1x8x8xf32>
    %168 = vector.shape_cast %167 : vector<1x1x8x8xf32> to vector<8x8xf32>
    %169 = vector.shape_cast %166 : vector<8x8xf32> to vector<1x1x8x8xf32>
    tpu.vector_store %arg5[%c0_115, %c6_116, %c0_117, %c0_118], %169 {strides = array<i32>} : memref<2x8x8x8xf32, #tpu.memory_space<vmem>>, vector<1x1x8x8xf32>,
    %170 = vector.broadcast %30 : f32 to vector<8x8xf32>
    %171 = arith.mulf %45, %170 : vector<8x8xf32>
    %172 = vector.broadcast %31 : f32 to vector<8x8xf32>
    %173 = arith.mulf %49, %172 : vector<8x8xf32>
    %174 = arith.addf %171, %173 : vector<8x8xf32>
    %175 = vector.broadcast %32 : f32 to vector<8x8xf32>
    %176 = arith.mulf %53, %175 : vector<8x8xf32>
    %177 = arith.addf %174, %176 : vector<8x8xf32>
    %178 = vector.broadcast %33 : f32 to vector<8x8xf32>
    %179 = arith.mulf %57, %178 : vector<8x8xf32>
    %180 = arith.addf %177, %179 : vector<8x8xf32>
    %181 = vector.broadcast %41 : f32 to vector<8x8xf32>
    %182 = arith.addf %180, %181 : vector<8x8xf32>
    %c0_119 = arith.constant 0 : index
    %c7_120 = arith.constant 7 : index
    %c0_121 = arith.constant 0 : index
    %c0_122 = arith.constant 0 : index
    %183 = vector.load %arg5[%c0_119, %c7_120, %c0_121, %c0_122] : memref<2x8x8x8xf32, #tpu.memory_space<vmem>>, vector<1x1x8x8xf32>
    %184 = vector.shape_cast %183 : vector<1x1x8x8xf32> to vector<8x8xf32>
    %185 = vector.shape_cast %182 : vector<8x8xf32> to vector<1x1x8x8xf32>
    tpu.vector_store %arg5[%c0_119, %c7_120, %c0_121, %c0_122], %185 {strides = array<i32>} : memref<2x8x8x8xf32, #tpu.memory_space<vmem>>, vector<1x1x8x8xf32>,
    %c1_123 = arith.constant 1 : index
    %c0_124 = arith.constant 0 : index
    %c0_125 = arith.constant 0 : index
    %c0_126 = arith.constant 0 : index
    %186 = vector.load %arg0[%c1_123, %c0_124, %c0_125, %c0_126] : memref<2x4x16x16xf32, #tpu.memory_space<vmem>>, vector<1x1x16x16xf32>
    %187 = vector.shape_cast %186 : vector<1x1x16x16xf32> to vector<16x16xf32>
    %cst_127 = arith.constant dense<0.000000e+00> : vector<8x16xf32>
    %188 = tpu.matmul %0, %187, %cst_127 {dimension_numbers = #tpu.dot_dimension_numbers<[1], [0], [0], [1], [0, 0, 1, 1], [], []>, precision = #tpu.contract_precision<fp32>} : vector<8x16xf32>, vector<16x16xf32>, vector<8x16xf32> -> vector<8x16xf32>
    %cst_128 = arith.constant dense<0.000000e+00> : vector<8x8xf32>
    %189 = tpu.matmul %188, %1, %cst_128 {dimension_numbers = #tpu.dot_dimension_numbers<[1], [0], [0], [1], [0, 0, 1, 1], [], []>, precision = #tpu.contract_precision<fp32>} : vector<8x16xf32>, vector<16x8xf32>, vector<8x8xf32> -> vector<8x8xf32>
    %c1_129 = arith.constant 1 : index
    %c1_130 = arith.constant 1 : index
    %c0_131 = arith.constant 0 : index
    %c0_132 = arith.constant 0 : index
    %190 = vector.load %arg0[%c1_129, %c1_130, %c0_131, %c0_132] : memref<2x4x16x16xf32, #tpu.memory_space<vmem>>, vector<1x1x16x16xf32>
    %191 = vector.shape_cast %190 : vector<1x1x16x16xf32> to vector<16x16xf32>
    %cst_133 = arith.constant dense<0.000000e+00> : vector<8x16xf32>
    %192 = tpu.matmul %0, %191, %cst_133 {dimension_numbers = #tpu.dot_dimension_numbers<[1], [0], [0], [1], [0, 0, 1, 1], [], []>, precision = #tpu.contract_precision<fp32>} : vector<8x16xf32>, vector<16x16xf32>, vector<8x16xf32> -> vector<8x16xf32>
    %cst_134 = arith.constant dense<0.000000e+00> : vector<8x8xf32>
    %193 = tpu.matmul %192, %1, %cst_134 {dimension_numbers = #tpu.dot_dimension_numbers<[1], [0], [0], [1], [0, 0, 1, 1], [], []>, precision = #tpu.contract_precision<fp32>} : vector<8x16xf32>, vector<16x8xf32>, vector<8x8xf32> -> vector<8x8xf32>
    %c1_135 = arith.constant 1 : index
    %c2_136 = arith.constant 2 : index
    %c0_137 = arith.constant 0 : index
    %c0_138 = arith.constant 0 : index
    %194 = vector.load %arg0[%c1_135, %c2_136, %c0_137, %c0_138] : memref<2x4x16x16xf32, #tpu.memory_space<vmem>>, vector<1x1x16x16xf32>
    %195 = vector.shape_cast %194 : vector<1x1x16x16xf32> to vector<16x16xf32>
    %cst_139 = arith.constant dense<0.000000e+00> : vector<8x16xf32>
    %196 = tpu.matmul %0, %195, %cst_139 {dimension_numbers = #tpu.dot_dimension_numbers<[1], [0], [0], [1], [0, 0, 1, 1], [], []>, precision = #tpu.contract_precision<fp32>} : vector<8x16xf32>, vector<16x16xf32>, vector<8x16xf32> -> vector<8x16xf32>
    %cst_140 = arith.constant dense<0.000000e+00> : vector<8x8xf32>
    %197 = tpu.matmul %196, %1, %cst_140 {dimension_numbers = #tpu.dot_dimension_numbers<[1], [0], [0], [1], [0, 0, 1, 1], [], []>, precision = #tpu.contract_precision<fp32>} : vector<8x16xf32>, vector<16x8xf32>, vector<8x8xf32> -> vector<8x8xf32>
    %c1_141 = arith.constant 1 : index
    %c3_142 = arith.constant 3 : index
    %c0_143 = arith.constant 0 : index
    %c0_144 = arith.constant 0 : index
    %198 = vector.load %arg0[%c1_141, %c3_142, %c0_143, %c0_144] : memref<2x4x16x16xf32, #tpu.memory_space<vmem>>, vector<1x1x16x16xf32>
    %199 = vector.shape_cast %198 : vector<1x1x16x16xf32> to vector<16x16xf32>
    %cst_145 = arith.constant dense<0.000000e+00> : vector<8x16xf32>
    %200 = tpu.matmul %0, %199, %cst_145 {dimension_numbers = #tpu.dot_dimension_numbers<[1], [0], [0], [1], [0, 0, 1, 1], [], []>, precision = #tpu.contract_precision<fp32>} : vector<8x16xf32>, vector<16x16xf32>, vector<8x16xf32> -> vector<8x16xf32>
    %cst_146 = arith.constant dense<0.000000e+00> : vector<8x8xf32>
    %201 = tpu.matmul %200, %1, %cst_146 {dimension_numbers = #tpu.dot_dimension_numbers<[1], [0], [0], [1], [0, 0, 1, 1], [], []>, precision = #tpu.contract_precision<fp32>} : vector<8x16xf32>, vector<16x8xf32>, vector<8x8xf32> -> vector<8x8xf32>
    %202 = vector.broadcast %2 : f32 to vector<8x8xf32>
    %203 = arith.mulf %189, %202 : vector<8x8xf32>
    %204 = vector.broadcast %3 : f32 to vector<8x8xf32>
    %205 = arith.mulf %193, %204 : vector<8x8xf32>
    %206 = arith.addf %203, %205 : vector<8x8xf32>
    %207 = vector.broadcast %4 : f32 to vector<8x8xf32>
    %208 = arith.mulf %197, %207 : vector<8x8xf32>
    %209 = arith.addf %206, %208 : vector<8x8xf32>
    %210 = vector.broadcast %5 : f32 to vector<8x8xf32>
    %211 = arith.mulf %201, %210 : vector<8x8xf32>
    %212 = arith.addf %209, %211 : vector<8x8xf32>
    %213 = vector.broadcast %34 : f32 to vector<8x8xf32>
    %214 = arith.addf %212, %213 : vector<8x8xf32>
    %c1_147 = arith.constant 1 : index
    %c0_148 = arith.constant 0 : index
    %c0_149 = arith.constant 0 : index
    %c0_150 = arith.constant 0 : index
    %215 = vector.load %arg5[%c1_147, %c0_148, %c0_149, %c0_150] : memref<2x8x8x8xf32, #tpu.memory_space<vmem>>, vector<1x1x8x8xf32>
    %216 = vector.shape_cast %215 : vector<1x1x8x8xf32> to vector<8x8xf32>
    %217 = vector.shape_cast %214 : vector<8x8xf32> to vector<1x1x8x8xf32>
    tpu.vector_store %arg5[%c1_147, %c0_148, %c0_149, %c0_150], %217 {strides = array<i32>} : memref<2x8x8x8xf32, #tpu.memory_space<vmem>>, vector<1x1x8x8xf32>,
    %218 = vector.broadcast %6 : f32 to vector<8x8xf32>
    %219 = arith.mulf %189, %218 : vector<8x8xf32>
    %220 = vector.broadcast %7 : f32 to vector<8x8xf32>
    %221 = arith.mulf %193, %220 : vector<8x8xf32>
    %222 = arith.addf %219, %221 : vector<8x8xf32>
    %223 = vector.broadcast %8 : f32 to vector<8x8xf32>
    %224 = arith.mulf %197, %223 : vector<8x8xf32>
    %225 = arith.addf %222, %224 : vector<8x8xf32>
    %226 = vector.broadcast %9 : f32 to vector<8x8xf32>
    %227 = arith.mulf %201, %226 : vector<8x8xf32>
    %228 = arith.addf %225, %227 : vector<8x8xf32>
    %229 = vector.broadcast %35 : f32 to vector<8x8xf32>
    %230 = arith.addf %228, %229 : vector<8x8xf32>
    %c1_151 = arith.constant 1 : index
    %c1_152 = arith.constant 1 : index
    %c0_153 = arith.constant 0 : index
    %c0_154 = arith.constant 0 : index
    %231 = vector.load %arg5[%c1_151, %c1_152, %c0_153, %c0_154] : memref<2x8x8x8xf32, #tpu.memory_space<vmem>>, vector<1x1x8x8xf32>
    %232 = vector.shape_cast %231 : vector<1x1x8x8xf32> to vector<8x8xf32>
    %233 = vector.shape_cast %230 : vector<8x8xf32> to vector<1x1x8x8xf32>
    tpu.vector_store %arg5[%c1_151, %c1_152, %c0_153, %c0_154], %233 {strides = array<i32>} : memref<2x8x8x8xf32, #tpu.memory_space<vmem>>, vector<1x1x8x8xf32>,
    %234 = vector.broadcast %10 : f32 to vector<8x8xf32>
    %235 = arith.mulf %189, %234 : vector<8x8xf32>
    %236 = vector.broadcast %11 : f32 to vector<8x8xf32>
    %237 = arith.mulf %193, %236 : vector<8x8xf32>
    %238 = arith.addf %235, %237 : vector<8x8xf32>
    %239 = vector.broadcast %12 : f32 to vector<8x8xf32>
    %240 = arith.mulf %197, %239 : vector<8x8xf32>
    %241 = arith.addf %238, %240 : vector<8x8xf32>
    %242 = vector.broadcast %13 : f32 to vector<8x8xf32>
    %243 = arith.mulf %201, %242 : vector<8x8xf32>
    %244 = arith.addf %241, %243 : vector<8x8xf32>
    %245 = vector.broadcast %36 : f32 to vector<8x8xf32>
    %246 = arith.addf %244, %245 : vector<8x8xf32>
    %c1_155 = arith.constant 1 : index
    %c2_156 = arith.constant 2 : index
    %c0_157 = arith.constant 0 : index
    %c0_158 = arith.constant 0 : index
    %247 = vector.load %arg5[%c1_155, %c2_156, %c0_157, %c0_158] : memref<2x8x8x8xf32, #tpu.memory_space<vmem>>, vector<1x1x8x8xf32>
    %248 = vector.shape_cast %247 : vector<1x1x8x8xf32> to vector<8x8xf32>
    %249 = vector.shape_cast %246 : vector<8x8xf32> to vector<1x1x8x8xf32>
    tpu.vector_store %arg5[%c1_155, %c2_156, %c0_157, %c0_158], %249 {strides = array<i32>} : memref<2x8x8x8xf32, #tpu.memory_space<vmem>>, vector<1x1x8x8xf32>,
    %250 = vector.broadcast %14 : f32 to vector<8x8xf32>
    %251 = arith.mulf %189, %250 : vector<8x8xf32>
    %252 = vector.broadcast %15 : f32 to vector<8x8xf32>
    %253 = arith.mulf %193, %252 : vector<8x8xf32>
    %254 = arith.addf %251, %253 : vector<8x8xf32>
    %255 = vector.broadcast %16 : f32 to vector<8x8xf32>
    %256 = arith.mulf %197, %255 : vector<8x8xf32>
    %257 = arith.addf %254, %256 : vector<8x8xf32>
    %258 = vector.broadcast %17 : f32 to vector<8x8xf32>
    %259 = arith.mulf %201, %258 : vector<8x8xf32>
    %260 = arith.addf %257, %259 : vector<8x8xf32>
    %261 = vector.broadcast %37 : f32 to vector<8x8xf32>
    %262 = arith.addf %260, %261 : vector<8x8xf32>
    %c1_159 = arith.constant 1 : index
    %c3_160 = arith.constant 3 : index
    %c0_161 = arith.constant 0 : index
    %c0_162 = arith.constant 0 : index
    %263 = vector.load %arg5[%c1_159, %c3_160, %c0_161, %c0_162] : memref<2x8x8x8xf32, #tpu.memory_space<vmem>>, vector<1x1x8x8xf32>
    %264 = vector.shape_cast %263 : vector<1x1x8x8xf32> to vector<8x8xf32>
    %265 = vector.shape_cast %262 : vector<8x8xf32> to vector<1x1x8x8xf32>
    tpu.vector_store %arg5[%c1_159, %c3_160, %c0_161, %c0_162], %265 {strides = array<i32>} : memref<2x8x8x8xf32, #tpu.memory_space<vmem>>, vector<1x1x8x8xf32>,
    %266 = vector.broadcast %18 : f32 to vector<8x8xf32>
    %267 = arith.mulf %189, %266 : vector<8x8xf32>
    %268 = vector.broadcast %19 : f32 to vector<8x8xf32>
    %269 = arith.mulf %193, %268 : vector<8x8xf32>
    %270 = arith.addf %267, %269 : vector<8x8xf32>
    %271 = vector.broadcast %20 : f32 to vector<8x8xf32>
    %272 = arith.mulf %197, %271 : vector<8x8xf32>
    %273 = arith.addf %270, %272 : vector<8x8xf32>
    %274 = vector.broadcast %21 : f32 to vector<8x8xf32>
    %275 = arith.mulf %201, %274 : vector<8x8xf32>
    %276 = arith.addf %273, %275 : vector<8x8xf32>
    %277 = vector.broadcast %38 : f32 to vector<8x8xf32>
    %278 = arith.addf %276, %277 : vector<8x8xf32>
    %c1_163 = arith.constant 1 : index
    %c4_164 = arith.constant 4 : index
    %c0_165 = arith.constant 0 : index
    %c0_166 = arith.constant 0 : index
    %279 = vector.load %arg5[%c1_163, %c4_164, %c0_165, %c0_166] : memref<2x8x8x8xf32, #tpu.memory_space<vmem>>, vector<1x1x8x8xf32>
    %280 = vector.shape_cast %279 : vector<1x1x8x8xf32> to vector<8x8xf32>
    %281 = vector.shape_cast %278 : vector<8x8xf32> to vector<1x1x8x8xf32>
    tpu.vector_store %arg5[%c1_163, %c4_164, %c0_165, %c0_166], %281 {strides = array<i32>} : memref<2x8x8x8xf32, #tpu.memory_space<vmem>>, vector<1x1x8x8xf32>,
    %282 = vector.broadcast %22 : f32 to vector<8x8xf32>
    %283 = arith.mulf %189, %282 : vector<8x8xf32>
    %284 = vector.broadcast %23 : f32 to vector<8x8xf32>
    %285 = arith.mulf %193, %284 : vector<8x8xf32>
    %286 = arith.addf %283, %285 : vector<8x8xf32>
    %287 = vector.broadcast %24 : f32 to vector<8x8xf32>
    %288 = arith.mulf %197, %287 : vector<8x8xf32>
    %289 = arith.addf %286, %288 : vector<8x8xf32>
    %290 = vector.broadcast %25 : f32 to vector<8x8xf32>
    %291 = arith.mulf %201, %290 : vector<8x8xf32>
    %292 = arith.addf %289, %291 : vector<8x8xf32>
    %293 = vector.broadcast %39 : f32 to vector<8x8xf32>
    %294 = arith.addf %292, %293 : vector<8x8xf32>
    %c1_167 = arith.constant 1 : index
    %c5_168 = arith.constant 5 : index
    %c0_169 = arith.constant 0 : index
    %c0_170 = arith.constant 0 : index
    %295 = vector.load %arg5[%c1_167, %c5_168, %c0_169, %c0_170] : memref<2x8x8x8xf32, #tpu.memory_space<vmem>>, vector<1x1x8x8xf32>
    %296 = vector.shape_cast %295 : vector<1x1x8x8xf32> to vector<8x8xf32>
    %297 = vector.shape_cast %294 : vector<8x8xf32> to vector<1x1x8x8xf32>
    tpu.vector_store %arg5[%c1_167, %c5_168, %c0_169, %c0_170], %297 {strides = array<i32>} : memref<2x8x8x8xf32, #tpu.memory_space<vmem>>, vector<1x1x8x8xf32>,
    %298 = vector.broadcast %26 : f32 to vector<8x8xf32>
    %299 = arith.mulf %189, %298 : vector<8x8xf32>
    %300 = vector.broadcast %27 : f32 to vector<8x8xf32>
    %301 = arith.mulf %193, %300 : vector<8x8xf32>
    %302 = arith.addf %299, %301 : vector<8x8xf32>
    %303 = vector.broadcast %28 : f32 to vector<8x8xf32>
    %304 = arith.mulf %197, %303 : vector<8x8xf32>
    %305 = arith.addf %302, %304 : vector<8x8xf32>
    %306 = vector.broadcast %29 : f32 to vector<8x8xf32>
    %307 = arith.mulf %201, %306 : vector<8x8xf32>
    %308 = arith.addf %305, %307 : vector<8x8xf32>
    %309 = vector.broadcast %40 : f32 to vector<8x8xf32>
    %310 = arith.addf %308, %309 : vector<8x8xf32>
    %c1_171 = arith.constant 1 : index
    %c6_172 = arith.constant 6 : index
    %c0_173 = arith.constant 0 : index
    %c0_174 = arith.constant 0 : index
    %311 = vector.load %arg5[%c1_171, %c6_172, %c0_173, %c0_174] : memref<2x8x8x8xf32, #tpu.memory_space<vmem>>, vector<1x1x8x8xf32>
    %312 = vector.shape_cast %311 : vector<1x1x8x8xf32> to vector<8x8xf32>
    %313 = vector.shape_cast %310 : vector<8x8xf32> to vector<1x1x8x8xf32>
    tpu.vector_store %arg5[%c1_171, %c6_172, %c0_173, %c0_174], %313 {strides = array<i32>} : memref<2x8x8x8xf32, #tpu.memory_space<vmem>>, vector<1x1x8x8xf32>,
    %314 = vector.broadcast %30 : f32 to vector<8x8xf32>
    %315 = arith.mulf %189, %314 : vector<8x8xf32>
    %316 = vector.broadcast %31 : f32 to vector<8x8xf32>
    %317 = arith.mulf %193, %316 : vector<8x8xf32>
    %318 = arith.addf %315, %317 : vector<8x8xf32>
    %319 = vector.broadcast %32 : f32 to vector<8x8xf32>
    %320 = arith.mulf %197, %319 : vector<8x8xf32>
    %321 = arith.addf %318, %320 : vector<8x8xf32>
    %322 = vector.broadcast %33 : f32 to vector<8x8xf32>
    %323 = arith.mulf %201, %322 : vector<8x8xf32>
    %324 = arith.addf %321, %323 : vector<8x8xf32>
    %325 = vector.broadcast %41 : f32 to vector<8x8xf32>
    %326 = arith.addf %324, %325 : vector<8x8xf32>
    %c1_175 = arith.constant 1 : index
    %c7_176 = arith.constant 7 : index
    %c0_177 = arith.constant 0 : index
    %c0_178 = arith.constant 0 : index
    %327 = vector.load %arg5[%c1_175, %c7_176, %c0_177, %c0_178] : memref<2x8x8x8xf32, #tpu.memory_space<vmem>>, vector<1x1x8x8xf32>
    %328 = vector.shape_cast %327 : vector<1x1x8x8xf32> to vector<8x8xf32>
    %329 = vector.shape_cast %326 : vector<8x8xf32> to vector<1x1x8x8xf32>
    tpu.vector_store %arg5[%c1_175, %c7_176, %c0_177, %c0_178], %329 {strides = array<i32>} : memref<2x8x8x8xf32, #tpu.memory_space<vmem>>, vector<1x1x8x8xf32>,
    return
  }
}

</mosaic_0001>

<bundles_post_ra>
// kernel: transition_forward.1
= control target key start
LH: loop header
LB: loop body
LE: loop exit
PB: predicated region body
PF: predicated region fallthrough
CT: control target
= control target key end

     0   :  { %s10086_s0 = inlined_call_operand.hbm [shape: f32[2,4,16,16], index: 0, kind: input, shape index: {}]   ;;  %s10087_s1 = inlined_call_operand.vmem [shape: f32[8,16], index: 1, kind: input, shape index: {}]   ;;  %s10088_s2 = inlined_call_operand.vmem [shape: f32[16,8], index: 2, kind: input, shape index: {}]   ;;  %s10089_s3 = inlined_call_operand.vmem [shape: f32[8,4], index: 3, kind: input, shape index: {}]   ;;  %s10090_s4 = inlined_call_operand.vmem [shape: f32[8], index: 4, kind: input, shape index: {}]   ;;  %s10091_s5 = inlined_call_operand.hbm [shape: f32[2,8,8,8], index: 5, kind: output, shape index: {}]  }
   0x1   :  { %10110 = sst [smem:[#allocation24_spill]] %s10091_s5 }
   0x2   :  { %10 = vsyncpa [#allocation3], 0 }
   0x3   :  { %11 = vsyncpa [#allocation5], 0 }
   0x4   :  { %12 = vsyncpa [#allocation8], 0 }
   0x5   :  { %13 = vsyncpa [#allocation4], 0  ;;  %s9248_s18 = smov [#allocation2]   ;;  %s36_s22 = sshll.u32 %s10089_s3, 4  ;;  %s37_s22 = int_to_ptr.vmem [resolvable:$true] %s36_s22 }
   0x6   :  { %s19_s19 = sshll.u32 %s9248_s18, 4  ;;  %s9172_s25 = scalar_lea.hbm %s10086_s0, 2048  ;;  %s20_s19 = int_to_ptr.vmem [resolvable:$true] %s19_s19 }
   0x7   :  { %p9173_p0 = scmp.ne.s32.totalorder %s10086_s0, %s9172_s25  ;;  %p9176_p1 = scmp.lt.u32.totalorder %s9172_s25, %s10086_s0 }
   0x9   :  { %p9178_p2 = pnand %p9176_p1, %p9173_p0 }
   0xb   :  { %9181 = shalt.err (!%p9178_p2)
}
   0xc   :  { %s9182_s30 = scalar_lea.vmem %s20_s19, 2048  ;;  %p9187_p4 = scmp.lt.s32.totalorder %s20_s19, %s20_s19 }
   0xd   :  { %p9183_p3 = scmp.ne.s32.totalorder %s20_s19, %s9182_s30  ;;  %p9188_p5 = scmp.lt.s32.totalorder %s9182_s30, %s9182_s30 }
   0xf   :  { %p9189_p6 = por %p9188_p5, %p9187_p4 }
  0x11   :  { %p9190_p7 = pnand %p9189_p6, %p9183_p3 }
  0x13   :  { %9193 = shalt.err (!%p9190_p7)
}
  0x14   :  { %s10092_s3 = smov 128   ;;  %s10093_s6 = smov 8  }
  0x15   :  { %25 = dma.hbm_to_vmem [thread:$0]  %s10086_s0, 2048, %s20_s19, [#allocation3], %s10092_s3, %s10092_s3, %s10093_s6  }
  0x16   :  { %s9194_s9 = scalar_lea.vmem %s37_s22, 128  ;;  %p9199_p9 = scmp.lt.s32.totalorder %s37_s22, %s37_s22 }
  0x17   :  { %p9195_p8 = scmp.ne.s32.totalorder %s37_s22, %s9194_s9  ;;  %p9200_p10 = scmp.lt.s32.totalorder %s9194_s9, %s9194_s9 }
  0x19   :  { %p9201_p11 = por %p9200_p10, %p9199_p9 }
  0x1b   :  { %p9202_p12 = pnand %p9201_p11, %p9195_p8 }
  0x1d   :  { %9205 = shalt.err (!%p9202_p12)
}
  0x1e   :  { %s9251_s10 = smov [#allocation6]   ;;  %s46_s13 = sshll.u32 %s10090_s4, 4  ;;  %s47_s13 = int_to_ptr.vmem [resolvable:$true] %s46_s13 }
  0x1f   :  { %39 = dma.vmem_to_smem %s37_s22, 128, %s9251_s10, [#allocation5]  }
  0x20   :  { %s9206_s14 = scalar_lea.vmem %s47_s13, 16  ;;  %p9211_p0 = scmp.lt.s32.totalorder %s47_s13, %s47_s13 }
  0x21   :  { %p9207_p13 = scmp.ne.s32.totalorder %s47_s13, %s9206_s14  ;;  %p9212_p1 = scmp.lt.s32.totalorder %s9206_s14, %s9206_s14 }
  0x23   :  { %p9213_p2 = por %p9212_p1, %p9211_p0 }
  0x25   :  { %p9214_p3 = pnand %p9213_p2, %p9207_p13 }
  0x27   :  { %9217 = shalt.err (!%p9214_p3)
}
  0x28   :  { %s9252_s0 = smov [#allocation7]  }
  0x29   :  { %49 = dma.vmem_to_smem %s47_s13, 16, %s9252_s0, [#allocation8]  }
  0x2a   :  { %9240 = dma.done.wait [#allocation3], 2048  }
  0x2b   :  { %9241 = vsyncadd [#allocation3], 4294965248 }
  0x2c   :  { %9242 = dma.done.wait [#allocation5], 128  }
  0x2d   :  { %9243 = vsyncadd [#allocation5], 4294967168 }
  0x2e   :  { %9244 = dma.done.wait [#allocation8], 16  }
  0x2f   :  { %9245 = vsyncadd [#allocation8], 4294967280 }
  0x30   :  { %59 = sfence }
  0x31   :  { %v103_v0 = vld [vmem:[#allocation2] sm:$0xff]  ;;  %v104_v1 = vld [vmem:[#allocation2 + $0x8] sm:$0xff]  ;;  %v9253_v3 = vmov 0.0|0.0   ;;  %vm9254_vm0 = vmmov 0   ;;  %v9255_v6 = vmov 0.0   ;;  %vm105_vm1 = vcmask 130048  }
  0x32   :  { %v60_v2 = vld [vmem:[%s10087_s1] sm:$0xff]  ;;  %8715 = vmatprep.subr.bf16.mxu0 %v9253_v3  ;;  %v110_v4 = vand.u32 4294901760, %v103_v0  ;;  %v113_v5 = vand.u32 4294901760, %v104_v1  ;;  %8047 = vmatprep.mubr.msk.f32.mxu0 %vm9254_vm0, %v9255_v6  ;;  %v1031_v24 = vld [vmem:[#allocation2 + $0x10] sm:$0xff]  ;;  %v1032_v25 = vld [vmem:[#allocation2 + $0x18] sm:$0xff]  ;;  %s9719_s19 = sld [smem:[#allocation6 + $0x80]] }
  0x33   :  { %v107_v7 = vsel %vm105_vm1, %v60_v2, 0  ;;  %8733 = vmatprep.subr.bf16.mxu1 %v9253_v3  ;;  %8089 = vmatprep.mubr.msk.f32.mxu1 %vm9254_vm0, %v9255_v6  ;;  %v1034_v27 = vand.u32 4294901760, %v1031_v24  ;;  %v1037_v28 = vand.u32 4294901760, %v1032_v25  ;;  %v1955_v40 = vld [vmem:[#allocation2 + $0x20] sm:$0xff]  ;;  %v1956_v41 = vld [vmem:[#allocation2 + $0x28] sm:$0xff]  ;;  %v2879_v56 = vld [vmem:[#allocation2 + $0x30] sm:$0xff] }
  0x34   :  { %v8716_v8 = vpack.c.bf16 %v113_v5, %v110_v4  ;;  %v188_v9 = vsub.f32 %v103_v0, %v110_v4  ;;  %v195_v10 = vsub.f32 %v104_v1, %v113_v5  ;;  %v9318_v11 = vand.u32 4294901760, %v107_v7  ;;  %v2880_v57 = vld [vmem:[#allocation2 + $0x38] sm:$0xff]  ;;  %s9721_s20 = sld [smem:[#allocation6 + $0x100]]  ;;  %s9736_s26 = sld [smem:[#allocation6 + $0x1]] }
  0x35   :  { %v1112_v29 = vsub.f32 %v1031_v24, %v1034_v27  ;;  %v1119_v30 = vsub.f32 %v1032_v25, %v1037_v28  ;;  %v8752_v35 = vpack.c.bf16 %v1037_v28, %v1034_v27  ;;  %v1958_v43 = vand.u32 4294901760, %v1955_v40  ;;  %s9723_s21 = sld [smem:[#allocation6 + $0x180]]  ;;  %s9738_s27 = sld [smem:[#allocation6 + $0x81]] }
  0x36   :  { %8717 = vmatpush3.bf16.msra.mxu0 %v8716_v8  ;;  %v9321_v12 = vsub.f32 %v107_v7, %v9318_v11  ;;  %v189_v13 = vand.u32 4294901760, %v188_v9  ;;  %v196_v14 = vand.u32 4294901760, %v195_v10  ;;  %v8722_v23 = vpack.c.bf16 %v195_v10, %v188_v9  ;;  %s9725_s22 = sld [smem:[#allocation6 + $0x200]]  ;;  %s9741_s28 = sld [smem:[#allocation6 + $0x101]] }
  0x37   :  { %8718 = vmatprep.subr.bf16.mxu0 %v9253_v3  ;;  %v1113_v31 = vand.u32 4294901760, %v1112_v29  ;;  %v1120_v32 = vand.u32 4294901760, %v1119_v30  ;;  %v8758_v39 = vpack.c.bf16 %v1119_v30, %v1112_v29  ;;  %v1961_v44 = vand.u32 4294901760, %v1956_v41  ;;  %s9727_s23 = sld [smem:[#allocation6 + $0x280]]  ;;  %s9743_s29 = sld [smem:[#allocation6 + $0x181]] }
  0x38   :  { %v9325_v15 = vand.u32 4294901760, %v9321_v12  ;;  %v190_v16 = vsub.f32 %v188_v9, %v189_v13  ;;  %v197_v17 = vsub.f32 %v195_v10, %v196_v14  ;;  %v8728_v26 = vpack.c.bf16 %v196_v14, %v189_v13  ;;  %v62_v9 = vld [vmem:[%s10088_s2 + $0x8] sm:$0xff]  ;;  %s9729_s24 = sld [smem:[#allocation6 + $0x300]]  ;;  %s9745_s30 = sld [smem:[#allocation6 + $0x201]] }
  0x39   :  { %v1114_v33 = vsub.f32 %v1112_v29, %v1113_v31  ;;  %v1121_v34 = vsub.f32 %v1119_v30, %v1120_v32  ;;  %v8764_v42 = vpack.c.bf16 %v1120_v32, %v1113_v31  ;;  %v2036_v45 = vsub.f32 %v1955_v40, %v1958_v43  ;;  %v3923_v29 = vld [vmem:[#allocation2 + $0x40] sm:$0xff]  ;;  %v3924_v30 = vld [vmem:[#allocation2 + $0x48] sm:$0xff]  ;;  %s9731_s25 = sld [smem:[#allocation6 + $0x380]]  ;;  %s9747_s7 = sld [smem:[#allocation6 + $0x281]] }
  0x3a   :  { %v179_v18 = vsub.f32 %v9321_v12, %v9325_v15  ;;  %v191_v19 = vand.u32 4294901760, %v190_v16  ;;  %v198_v20 = vand.u32 4294901760, %v197_v17  ;;  %v2043_v46 = vsub.f32 %v1956_v41, %v1961_v44  ;;  %s9749_s8 = sld [smem:[#allocation6 + $0x301]]  ;;  %s9840_s10 = sld [smem:[#allocation6 + $0x2]] }
  0x3b   :  { %v1115_v36 = vand.u32 4294901760, %v1114_v33  ;;  %v1122_v37 = vand.u32 4294901760, %v1121_v34  ;;  %v2037_v47 = vand.u32 4294901760, %v2036_v45  ;;  %v8788_v51 = vpack.c.bf16 %v1961_v44, %v1958_v43  ;;  %s9751_s9 = sld [smem:[#allocation6 + $0x381]]  ;;  %s9842_s11 = sld [smem:[#allocation6 + $0x82]] }
  0x3c   :  { %v9329_v21 = vand.u32 4294901760, %v179_v18  ;;  %v8719_v22 = vpack.c.bf16 %v198_v20, %v191_v19  ;;  %v2044_v48 = vand.u32 4294901760, %v2043_v46  ;;  %v8794_v55 = vpack.c.bf16 %v2043_v46, %v2036_v45  ;;  %s9847_s12 = sld [smem:[#allocation6 + $0x102]]  ;;  %s9895_s1 = sld [smem:[#allocation6 + $0x3]] }
  0x3d   :  { %v8755_v38 = vpack.c.bf16 %v1122_v37, %v1115_v36  ;;  %v2038_v49 = vsub.f32 %v2036_v45, %v2037_v47  ;;  %v2882_v59 = vand.u32 4294901760, %v2879_v56  ;;  %v2885_v60 = vand.u32 4294901760, %v2880_v57  ;;  %s9849_s13 = sld [smem:[#allocation6 + $0x182]]  ;;  %s9897_s16 = sld [smem:[#allocation6 + $0x83]] }
  0x3e   :  { %8048 = vmatmul.mubr.f32.vlgmr.msra.gmra.mrb[0].mxu0 %v9329_v21  ;;  %v2045_v50 = vsub.f32 %v2043_v46, %v2044_v48  ;;  %v8800_v58 = vpack.c.bf16 %v2044_v48, %v2037_v47  ;;  %v575_v13 = vand.u32 4294901760, %v62_v9  ;;  %v3926_v32 = vand.u32 4294901760, %v3923_v29  ;;  %v4847_v46 = vld [vmem:[#allocation2 + $0x50] sm:$0xff]  ;;  %v4848_v47 = vld [vmem:[#allocation2 + $0x58] sm:$0xff]  ;;  %s9852_s14 = sld [smem:[#allocation6 + $0x202]]  ;;  %s9899_s17 = sld [smem:[#allocation6 + $0x103]] }
  0x3f   :  { %8720 = vmatpush3.bf16.msra.mxu0 %v8719_v22  ;;  %8054 = vmatprep.mubr.msk.f32.mxu0 %vm9254_vm0, %v9255_v6  ;;  %v2039_v52 = vand.u32 4294901760, %v2038_v49  ;;  %v2960_v61 = vsub.f32 %v2879_v56, %v2882_v59  ;;  %v2967_v62 = vsub.f32 %v2880_v57, %v2885_v60  ;;  %v8824_v4 = vpack.c.bf16 %v2885_v60, %v2882_v59  ;;  %s9854_s0 = sld [smem:[#allocation6 + $0x282]]  ;;  %s9901_s18 = sld [smem:[#allocation6 + $0x183]] }
  0x40   :  { %8721 = vmatprep.subr.bf16.mxu0 %v9253_v3  ;;  %v2046_v53 = vand.u32 4294901760, %v2045_v50  ;;  %v657_v18 = vsub.f32 %v62_v9, %v575_v13  ;;  %v3929_v33 = vand.u32 4294901760, %v3924_v30  ;;  %v4004_v34 = vsub.f32 %v3923_v29, %v3926_v32  ;;  %10112 = sst [smem:[#allocation15_spill]] %s9840_s10  ;;  %s9856_s4 = sld [smem:[#allocation6 + $0x302]] }
  0x41   :  { %v2961_v63 = vand.u32 4294901760, %v2960_v61  ;;  %v2968_v0 = vand.u32 4294901760, %v2967_v62  ;;  %v4850_v49 = vand.u32 4294901760, %v4847_v46  ;;  %v4853_v50 = vand.u32 4294901760, %v4848_v47  ;;  %10111 = sst [smem:[#allocation14_spill]] %s9751_s9  ;;  %s9858_s15 = sld [smem:[#allocation6 + $0x382]] }
  0x42   :  { %v8791_v54 = vpack.c.bf16 %v2046_v53, %v2039_v52  ;;  %v658_v20 = vand.u32 4294901760, %v657_v18  ;;  %v4005_v37 = vand.u32 4294901760, %v4004_v34  ;;  %v8860_v41 = vpack.c.bf16 %v3929_v33, %v3926_v32  ;;  %v6696_v32 = vld [vmem:[#allocation2 + $0x78] sm:$0xff]  ;;  %10113 = sst [smem:[#allocation16_spill]] %s9842_s11  ;;  %s9903_s3 = sld [smem:[#allocation6 + $0x203]] }
  0x43   :  { %v2962_v1 = vsub.f32 %v2960_v61, %v2961_v63  ;;  %v2969_v2 = vsub.f32 %v2967_v62, %v2968_v0  ;;  %v8836_v31 = vpack.c.bf16 %v2968_v0, %v2961_v63  ;;  %v4935_v52 = vsub.f32 %v4848_v47, %v4853_v50  ;;  %v5772_v63 = vld [vmem:[#allocation2 + $0x68] sm:$0xff]  ;;  %10114 = sst [smem:[#allocation17_spill]] %s9847_s12 }
  0x44   :  { %v8896_v57 = vpack.c.bf16 %v4853_v50, %v4850_v49  ;;  %10115 = sst [smem:[#allocation18_spill]] %s9849_s13  ;;  %s9905_s6 = sld [smem:[#allocation6 + $0x283]]  ;;  %vm3815_vm2 = vcmask 64512  }
  0x45   :  { %v2963_v5 = vand.u32 4294901760, %v2962_v1  ;;  %v2970_v7 = vand.u32 4294901760, %v2969_v2  ;;  %v5777_v2 = vand.u32 4294901760, %v5772_v63  ;;  %10116 = sst [smem:[#allocation19_spill]] %s9852_s14  ;;  %s9907_s5 = sld [smem:[#allocation6 + $0x303]] }
  0x46   :  { %8055 = vmatmul.mubr.f32.vlgmr.msra.gmra.mrb[0].mxu0 %v9318_v11  ;;  %10117 = sst [smem:[#allocation20_spill]] %s9854_s0 }
  0x47   :  { %8723 = vmatpush3.bf16.msra.mxu0 %v8722_v23  ;;  %8061 = vmatprep.mubr.msk.f32.mxu0 %vm9254_vm0, %v9255_v6  ;;  %v8827_v14 = vpack.c.bf16 %v2970_v7, %v2963_v5  ;;  %v659_v23 = vsub.f32 %v657_v18, %v658_v20  ;;  %v5859_v5 = vsub.f32 %v5772_v63, %v5777_v2  ;;  %10118 = sst [smem:[#allocation21_spill]] %s9856_s4 }
  0x48   :  { %8724 = vmatprep.subr.bf16.mxu0 %v9253_v3  ;;  %10119 = sst [smem:[#allocation22_spill]] %s9858_s15 }
  0x49   :  { %v660_v25 = vand.u32 4294901760, %v659_v23 }
  0x4e   :  { %8062 = vmatmul.mubr.f32.vlgmr.msra.gmra.mrb[0].mxu0 %v9321_v12 }
  0x4f   :  { %8726 = vmatpush3.bf16.msra.mxu0 %v8716_v8  ;;  %8068 = vmatprep.mubr.msk.f32.mxu0 %vm9254_vm0, %v9255_v6 }
  0x50   :  { %8727 = vmatprep.subr.bf16.mxu0 %v9253_v3 }
  0x56   :  { %8069 = vmatmul.mubr.f32.vlgmr.msra.gmra.mrb[0].mxu0 %v9325_v15 }
  0x57   :  { %8729 = vmatpush3.bf16.msra.mxu0 %v8728_v26  ;;  %8075 = vmatprep.mubr.msk.f32.mxu0 %vm9254_vm0, %v9255_v6  ;;  %v8830_v26 = vpack.c.bf16 %v2967_v62, %v2960_v61  ;;  %v5771_v62 = vld [vmem:[#allocation2 + $0x60] sm:$0xff] }
  0x58   :  { %8730 = vmatprep.subr.bf16.mxu0 %v9253_v3  ;;  %v5774_v1 = vand.u32 4294901760, %v5771_v62 }
  0x5e   :  { %8076 = vmatmul.mubr.f32.vlgmr.msra.gmra.mrb[0].mxu0 %v9318_v11 }
  0x5f   :  { %8732 = vmatpush3.bf16.msra.mxu0 %v8716_v8  ;;  %8082 = vmatprep.mubr.msk.f32.mxu0 %vm9254_vm0, %v9255_v6  ;;  %v61_v8 = vld [vmem:[%s10088_s2] sm:$0xff]  ;;  %s9717_s2 = sld [smem:[#allocation6]] }
  0x60   :  { %8751 = vmatprep.subr.bf16.mxu0 %v9253_v3  ;;  %v572_v10 = vand.u32 4294901760, %v61_v8 }
  0x62   :  { %v9409_v16 = vpack.c.bf16 %v575_v13, %v572_v10  ;;  %v650_v17 = vsub.f32 %v61_v8, %v572_v10  ;;  %v5860_v8 = vand.u32 4294901760, %v5859_v5 }
  0x64   :  { %8735 = vmatpush3.bf16.msra.mxu1 %v9409_v16  ;;  %v651_v19 = vand.u32 4294901760, %v650_v17  ;;  %v9423_v28 = vpack.c.bf16 %v657_v18, %v650_v17  ;;  %v5861_v18 = vsub.f32 %v5859_v5, %v5860_v8 }
  0x65   :  { %8736 = vmatprep.subr.bf16.mxu1 %v9253_v3 }
  0x66   :  { %8083 = vmatmul.mubr.f32.vlgmr.msra.gmra.mrb[0].mxu0 %v9318_v11  ;;  %v652_v22 = vsub.f32 %v650_v17, %v651_v19  ;;  %v9433_v36 = vpack.c.bf16 %v658_v20, %v651_v19 }
  0x67   :  { %8753 = vmatpush3.bf16.msra.mxu0 %v8752_v35  ;;  %8131 = vmatprep.mubr.msk.f32.mxu0 %vm9254_vm0, %v9255_v6 }
  0x68   :  { %8754 = vmatprep.subr.bf16.mxu0 %v9253_v3  ;;  %v653_v24 = vand.u32 4294901760, %v652_v22  ;;  %v8932_v22 = vpack.c.bf16 %v5777_v2, %v5774_v1 }
  0x6a   :  { %8132 = vmatmul.mubr.f32.vlgmr.msra.gmra.mrb[2].mxu0 %v9329_v21  ;;  %v9417_v27 = vpack.c.bf16 %v660_v25, %v653_v24  ;;  %v5862_v24 = vand.u32 4294901760, %v5861_v18 }
  0x6b   :  { %8756 = vmatpush3.bf16.msra.mxu0 %v8755_v38  ;;  %8138 = vmatprep.mubr.msk.f32.mxu0 %vm9254_vm0, %v9255_v6 }
  0x6c   :  { %8757 = vmatprep.subr.bf16.mxu0 %v9253_v3 }
  0x72   :  { %8139 = vmatmul.mubr.f32.vlgmr.msra.gmra.mrb[2].mxu0 %v9318_v11 }
  0x73   :  { %8759 = vmatpush3.bf16.msra.mxu0 %v8758_v39  ;;  %8145 = vmatprep.mubr.msk.f32.mxu0 %vm9254_vm0, %v9255_v6  ;;  %v4006_v39 = vsub.f32 %v4004_v34, %v4005_v37 }
  0x74   :  { %8760 = vmatprep.subr.bf16.mxu0 %v9253_v3 }
  0x7a   :  { %8146 = vmatmul.mubr.f32.vlgmr.msra.gmra.mrb[2].mxu0 %v9321_v12 }
  0x7b   :  { %8762 = vmatpush3.bf16.msra.mxu0 %v8752_v35  ;;  %8152 = vmatprep.mubr.msk.f32.mxu0 %vm9254_vm0, %v9255_v6 }
  0x7c   :  { %8763 = vmatprep.subr.bf16.mxu0 %v9253_v3 }
  0x82   :  { %8153 = vmatmul.mubr.f32.vlgmr.msra.gmra.mrb[2].mxu0 %v9325_v15 }
  0x83   :  { %8765 = vmatpush3.bf16.msra.mxu0 %v8764_v42  ;;  %8159 = vmatprep.mubr.msk.f32.mxu0 %vm9254_vm0, %v9255_v6  ;;  %v4007_v42 = vand.u32 4294901760, %v4006_v39 }
  0x84   :  { %8766 = vmatprep.subr.bf16.mxu0 %v9253_v3 }
  0x8a   :  { %8160 = vmatmul.mubr.f32.vlgmr.msra.gmra.mrb[2].mxu0 %v9318_v11 }
  0x8b   :  { %8768 = vmatpush3.bf16.msra.mxu0 %v8752_v35  ;;  %8166 = vmatprep.mubr.msk.f32.mxu0 %vm9254_vm0, %v9255_v6  ;;  %v4011_v35 = vsub.f32 %v3924_v30, %v3929_v33 }
  0x8c   :  { %8787 = vmatprep.subr.bf16.mxu0 %v9253_v3 }
  0x8d   :  { %v4012_v38 = vand.u32 4294901760, %v4011_v35  ;;  %v8866_v45 = vpack.c.bf16 %v4011_v35, %v4004_v34 }
  0x8f   :  { %v4013_v40 = vsub.f32 %v4011_v35, %v4012_v38  ;;  %v8872_v48 = vpack.c.bf16 %v4012_v38, %v4005_v37  ;;  %v6701_v35 = vand.u32 4294901760, %v6696_v32 }
  0x91   :  { %v4014_v43 = vand.u32 4294901760, %v4013_v40  ;;  %v6783_v38 = vsub.f32 %v6696_v32, %v6701_v35 }
  0x92   :  { %8167 = vmatmul.mubr.f32.vlgmr.msra.gmra.mrb[2].mxu0 %v9318_v11 }
  0x93   :  { %8789 = vmatpush3.bf16.msra.mxu0 %v8788_v51  ;;  %8215 = vmatprep.mubr.msk.f32.mxu0 %vm9254_vm0, %v9255_v6  ;;  %v8863_v44 = vpack.c.bf16 %v4014_v43, %v4007_v42  ;;  %v6784_v40 = vand.u32 4294901760, %v6783_v38 }
  0x94   :  { %8790 = vmatprep.subr.bf16.mxu0 %v9253_v3 }
  0x96   :  { %8216 = vmatmul.mubr.f32.vlgmr.msra.gmra.mrb[4].mxu0 %v9329_v21 }
  0x97   :  { %8792 = vmatpush3.bf16.msra.mxu0 %v8791_v54  ;;  %8222 = vmatprep.mubr.msk.f32.mxu0 %vm9254_vm0, %v9255_v6  ;;  %v4936_v54 = vand.u32 4294901760, %v4935_v52 }
  0x98   :  { %8793 = vmatprep.subr.bf16.mxu0 %v9253_v3 }
  0x99   :  { %v4937_v56 = vsub.f32 %v4935_v52, %v4936_v54 }
  0x9b   :  { %v4938_v59 = vand.u32 4294901760, %v4937_v56 }
  0x9e   :  { %8223 = vmatmul.mubr.f32.vlgmr.msra.gmra.mrb[4].mxu0 %v9318_v11 }
  0x9f   :  { %8795 = vmatpush3.bf16.msra.mxu0 %v8794_v55  ;;  %8229 = vmatprep.mubr.msk.f32.mxu0 %vm9254_vm0, %v9255_v6 }
  0xa0   :  { %8796 = vmatprep.subr.bf16.mxu0 %v9253_v3 }
  0xa6   :  { %8230 = vmatmul.mubr.f32.vlgmr.msra.gmra.mrb[4].mxu0 %v9321_v12 }
  0xa7   :  { %8798 = vmatpush3.bf16.msra.mxu0 %v8788_v51  ;;  %8236 = vmatprep.mubr.msk.f32.mxu0 %vm9254_vm0, %v9255_v6 }
  0xa8   :  { %8799 = vmatprep.subr.bf16.mxu0 %v9253_v3 }
  0xae   :  { %8237 = vmatmul.mubr.f32.vlgmr.msra.gmra.mrb[4].mxu0 %v9325_v15 }
  0xaf   :  { %8801 = vmatpush3.bf16.msra.mxu0 %v8800_v58  ;;  %8243 = vmatprep.mubr.msk.f32.mxu0 %vm9254_vm0, %v9255_v6 }
  0xb0   :  { %8802 = vmatprep.subr.bf16.mxu0 %v9253_v3 }
  0xb6   :  { %8244 = vmatmul.mubr.f32.vlgmr.msra.gmra.mrb[4].mxu0 %v9318_v11 }
  0xb7   :  { %8804 = vmatpush3.bf16.msra.mxu0 %v8788_v51  ;;  %8250 = vmatprep.mubr.msk.f32.mxu0 %vm9254_vm0, %v9255_v6  ;;  %v4928_v51 = vsub.f32 %v4847_v46, %v4850_v49  ;;  %v6785_v46 = vsub.f32 %v6783_v38, %v6784_v40 }
  0xb8   :  { %8823 = vmatprep.subr.bf16.mxu0 %v9253_v3 }
  0xb9   :  { %v4929_v53 = vand.u32 4294901760, %v4928_v51  ;;  %v8902_v61 = vpack.c.bf16 %v4935_v52, %v4928_v51 }
  0xbb   :  { %v4930_v55 = vsub.f32 %v4928_v51, %v4929_v53  ;;  %v8908_v0 = vpack.c.bf16 %v4936_v54, %v4929_v53  ;;  %v6786_v51 = vand.u32 4294901760, %v6785_v46  ;;  %v3877_v46 = vstv %s9727_s23 }
  0xbd   :  { %v4931_v58 = vand.u32 4294901760, %v4930_v55 }
  0xbe   :  { %8251 = vmatmul.mubr.f32.vlgmr.msra.gmra.mrb[4].mxu0 %v9318_v11 }
  0xbf   :  { %8825 = vmatpush3.bf16.msra.mxu0 %v8824_v4  ;;  %8299 = vmatprep.mubr.msk.f32.mxu0 %vm9254_vm0, %v9255_v6  ;;  %v8899_v60 = vpack.c.bf16 %v4938_v59, %v4931_v58 }
  0xc0   :  { %8826 = vmatprep.subr.bf16.mxu0 %v9253_v3 }
  0xc2   :  { %8300 = vmatmul.mubr.f32.vlgmr.msra.gmra.mrb[6].mxu0 %v9329_v21 }
  0xc3   :  { %8828 = vmatpush3.bf16.msra.mxu0 %v8827_v14  ;;  %8306 = vmatprep.mubr.msk.f32.mxu0 %vm9254_vm0, %v9255_v6 }
  0xc4   :  { %8829 = vmatprep.subr.bf16.mxu0 %v9253_v3 }
  0xca   :  { %8307 = vmatmul.mubr.f32.vlgmr.msra.gmra.mrb[6].mxu0 %v9318_v11 }
  0xcb   :  { %8831 = vmatpush3.bf16.msra.mxu0 %v8830_v26  ;;  %8313 = vmatprep.mubr.msk.f32.mxu0 %vm9254_vm0, %v9255_v6 }
  0xcc   :  { %8832 = vmatprep.subr.bf16.mxu0 %v9253_v3 }
  0xd2   :  { %8314 = vmatmul.mubr.f32.vlgmr.msra.gmra.mrb[6].mxu0 %v9321_v12 }
  0xd3   :  { %8834 = vmatpush3.bf16.msra.mxu0 %v8824_v4  ;;  %8320 = vmatprep.mubr.msk.f32.mxu0 %vm9254_vm0, %v9255_v6 }
  0xd4   :  { %8835 = vmatprep.subr.bf16.mxu0 %v9253_v3 }
  0xda   :  { %8321 = vmatmul.mubr.f32.vlgmr.msra.gmra.mrb[6].mxu0 %v9325_v15 }
  0xdb   :  { %8837 = vmatpush3.bf16.msra.mxu0 %v8836_v31  ;;  %8327 = vmatprep.mubr.msk.f32.mxu0 %vm9254_vm0, %v9255_v6  ;;  %v6695_v31 = vld [vmem:[#allocation2 + $0x70] sm:$0xff] }
  0xdc   :  { %8838 = vmatprep.subr.bf16.mxu0 %v9253_v3  ;;  %v6698_v34 = vand.u32 4294901760, %v6695_v31 }
  0xde   :  { %v9524_v37 = vsub.f32 %v6695_v31, %v6698_v34  ;;  %v8968_v49 = vpack.c.bf16 %v6701_v35, %v6698_v34 }
  0xe0   :  { %v6777_v39 = vand.u32 4294901760, %v9524_v37  ;;  %v8974_v55 = vpack.c.bf16 %v6783_v38, %v9524_v37 }
  0xe2   :  { %8328 = vmatmul.mubr.f32.vlgmr.msra.gmra.mrb[6].mxu0 %v9318_v11 }
  0xe3   :  { %8840 = vmatpush3.bf16.msra.mxu0 %v8824_v4  ;;  %8334 = vmatprep.mubr.msk.f32.mxu0 %vm9254_vm0, %v9255_v6  ;;  %v5852_v4 = vsub.f32 %v5771_v62, %v5774_v1 }
  0xe4   :  { %8859 = vmatprep.subr.bf16.mxu0 %v9253_v3 }
  0xe5   :  { %v5853_v7 = vand.u32 4294901760, %v5852_v4  ;;  %v8938_v30 = vpack.c.bf16 %v5859_v5, %v5852_v4 }
  0xe7   :  { %v5854_v17 = vsub.f32 %v5852_v4, %v5853_v7  ;;  %v8944_v33 = vpack.c.bf16 %v5860_v8, %v5853_v7 }
  0xe9   :  { %v5855_v23 = vand.u32 4294901760, %v5854_v17 }
  0xea   :  { %8335 = vmatmul.mubr.f32.vlgmr.msra.gmra.mrb[6].mxu0 %v9318_v11 }
  0xeb   :  { %8861 = vmatpush3.bf16.msra.mxu0 %v8860_v41  ;;  %8383 = vmatprep.mubr.msk.f32.mxu0 %vm9254_vm0, %v9255_v6  ;;  %v8935_v29 = vpack.c.bf16 %v5862_v24, %v5855_v23 }
  0xec   :  { %8862 = vmatprep.subr.bf16.mxu0 %v9253_v3 }
  0xee   :  { %8384 = vmatmul.mubr.f32.vlgmr.msra.gmra.mrb[8].mxu0 %v9329_v21 }
  0xef   :  { %8864 = vmatpush3.bf16.msra.mxu0 %v8863_v44  ;;  %8390 = vmatprep.mubr.msk.f32.mxu0 %vm9254_vm0, %v9255_v6 }
  0xf0   :  { %8865 = vmatprep.subr.bf16.mxu0 %v9253_v3 }
  0xf6   :  { %8391 = vmatmul.mubr.f32.vlgmr.msra.gmra.mrb[8].mxu0 %v9318_v11 }
  0xf7   :  { %8867 = vmatpush3.bf16.msra.mxu0 %v8866_v45  ;;  %8397 = vmatprep.mubr.msk.f32.mxu0 %vm9254_vm0, %v9255_v6  ;;  %v6778_v45 = vsub.f32 %v9524_v37, %v6777_v39 }
  0xf8   :  { %8868 = vmatprep.subr.bf16.mxu0 %v9253_v3 }
  0xf9   :  { %v6779_v50 = vand.u32 4294901760, %v6778_v45  ;;  %v3862_v45 = vstv %s9725_s22 }
  0xfb   :  { %v8971_v54 = vpack.c.bf16 %v6786_v51, %v6779_v50  ;;  %v3819_v50 = vstv %s9738_s27  ;;  %v3834_v51 = vstv %s9741_s28  ;;  %s9256_s27 = smov [#allocation9]  }
  0xfe   :  { %8398 = vmatmul.mubr.f32.vlgmr.msra.gmra.mrb[8].mxu0 %v9321_v12 }
  0xff   :  { %8870 = vmatpush3.bf16.msra.mxu0 %v8860_v41  ;;  %8404 = vmatprep.mubr.msk.f32.mxu0 %vm9254_vm0, %v9255_v6 }
 0x100   :  { %8871 = vmatprep.subr.bf16.mxu0 %v9253_v3 }
 0x106   :  { %8405 = vmatmul.mubr.f32.vlgmr.msra.gmra.mrb[8].mxu0 %v9325_v15 }
 0x107   :  { %8873 = vmatpush3.bf16.msra.mxu0 %v8872_v48  ;;  %8411 = vmatprep.mubr.msk.f32.mxu0 %vm9254_vm0, %v9255_v6 }
 0x108   :  { %8874 = vmatprep.subr.bf16.mxu0 %v9253_v3 }
 0x10e   :  { %8412 = vmatmul.mubr.f32.vlgmr.msra.gmra.mrb[8].mxu0 %v9318_v11 }
 0x10f   :  { %8876 = vmatpush3.bf16.msra.mxu0 %v8860_v41  ;;  %8418 = vmatprep.mubr.msk.f32.mxu0 %vm9254_vm0, %v9255_v6 }
 0x110   :  { %8895 = vmatprep.subr.bf16.mxu0 %v9253_v3 }
 0x116   :  { %8419 = vmatmul.mubr.f32.vlgmr.msra.gmra.mrb[8].mxu0 %v9318_v11 }
 0x117   :  { %8897 = vmatpush3.bf16.msra.mxu0 %v8896_v57  ;;  %8467 = vmatprep.mubr.msk.f32.mxu0 %vm9254_vm0, %v9255_v6 }
 0x118   :  { %8898 = vmatprep.subr.bf16.mxu0 %v9253_v3 }
 0x11a   :  { %8468 = vmatmul.mubr.f32.vlgmr.msra.gmra.mrb[10].mxu0 %v9329_v21 }
 0x11b   :  { %8900 = vmatpush3.bf16.msra.mxu0 %v8899_v60  ;;  %8474 = vmatprep.mubr.msk.f32.mxu0 %vm9254_vm0, %v9255_v6 }
 0x11c   :  { %8901 = vmatprep.subr.bf16.mxu0 %v9253_v3 }
 0x122   :  { %8475 = vmatmul.mubr.f32.vlgmr.msra.gmra.mrb[10].mxu0 %v9318_v11 }
 0x123   :  { %8903 = vmatpush3.bf16.msra.mxu0 %v8902_v61  ;;  %8481 = vmatprep.mubr.msk.f32.mxu0 %vm9254_vm0, %v9255_v6 }
 0x124   :  { %8904 = vmatprep.subr.bf16.mxu0 %v9253_v3 }
 0x12a   :  { %8482 = vmatmul.mubr.f32.vlgmr.msra.gmra.mrb[10].mxu0 %v9321_v12 }
 0x12b   :  { %8906 = vmatpush3.bf16.msra.mxu0 %v8896_v57  ;;  %8488 = vmatprep.mubr.msk.f32.mxu0 %vm9254_vm0, %v9255_v6 }
 0x12c   :  { %8907 = vmatprep.subr.bf16.mxu0 %v9253_v3 }
 0x132   :  { %8489 = vmatmul.mubr.f32.vlgmr.msra.gmra.mrb[10].mxu0 %v9325_v15 }
 0x133   :  { %8909 = vmatpush3.bf16.msra.mxu0 %v8908_v0  ;;  %8495 = vmatprep.mubr.msk.f32.mxu0 %vm9254_vm0, %v9255_v6 }
 0x134   :  { %8910 = vmatprep.subr.bf16.mxu0 %v9253_v3 }
 0x139   :  { %v564_v9 = vpop.f32.mrb[0].mxu0 }
 0x13a   :  { %v569_v10 = vsel %vm105_vm1, %v564_v9, 0  ;;  %v8084_v13 = vpop.f32.mrb[1].mxu0  ;;  %8496 = vmatmul.mubr.f32.vlgmr.msra.gmra.mrb[10].mxu0 %v9318_v11 }
 0x13b   :  { %v9485_v14 = vand.u32 4294901760, %v569_v10  ;;  %8912 = vmatpush3.bf16.msra.mxu0 %v8896_v57  ;;  %8502 = vmatprep.mubr.msk.f32.mxu0 %vm9254_vm0, %v9255_v6 }
 0x13c   :  { %8931 = vmatprep.subr.bf16.mxu0 %v9253_v3 }
 0x13d   :  { %v639_v19 = vsub.f32 %v569_v10, %v9485_v14 }
 0x13f   :  { %v640_v20 = vand.u32 4294901760, %v639_v19 }
 0x141   :  { %v641_v25 = vsub.f32 %v639_v19, %v640_v20 }
 0x142   :  { %8503 = vmatmul.mubr.f32.vlgmr.msra.gmra.mrb[10].mxu0 %v9318_v11 }
 0x143   :  { %8933 = vmatpush3.bf16.msra.mxu0 %v8932_v22  ;;  %v642_v26 = vand.u32 4294901760, %v641_v25  ;;  %8551 = vmatprep.mubr.msk.f32.mxu0 %vm9254_vm0, %v9255_v6 }
 0x144   :  { %8934 = vmatprep.subr.bf16.mxu0 %v9253_v3 }
 0x145   :  { %8090 = vmatmul.mubr.f32.vlgmr.msra.gmra.mrb[0].mxu1 %v642_v26 }
 0x146   :  { %8738 = vmatpush3.bf16.msra.mxu1 %v9417_v27  ;;  %8552 = vmatmul.mubr.f32.vlgmr.msra.gmra.mrb[12].mxu0 %v9329_v21 }
 0x147   :  { %8936 = vmatpush3.bf16.msra.mxu0 %v8935_v29  ;;  %8096 = vmatprep.mubr.msk.f32.mxu1 %vm9254_vm0, %v9255_v6 }
 0x148   :  { %8739 = vmatprep.subr.bf16.mxu1 %v9253_v3  ;;  %8558 = vmatprep.mubr.msk.f32.mxu0 %vm9254_vm0, %v9255_v6 }
 0x149   :  { %8937 = vmatprep.subr.bf16.mxu0 %v9253_v3 }
 0x14d   :  { %8097 = vmatmul.mubr.f32.vlgmr.msra.gmra.mrb[0].mxu1 %v9485_v14 }
 0x14e   :  { %8741 = vmatpush3.bf16.msra.mxu1 %v9423_v28  ;;  %8559 = vmatmul.mubr.f32.vlgmr.msra.gmra.mrb[12].mxu0 %v9318_v11 }
 0x14f   :  { %8939 = vmatpush3.bf16.msra.mxu0 %v8938_v30  ;;  %8103 = vmatprep.mubr.msk.f32.mxu1 %vm9254_vm0, %v9255_v6 }
 0x150   :  { %8742 = vmatprep.subr.bf16.mxu1 %v9253_v3  ;;  %8565 = vmatprep.mubr.msk.f32.mxu0 %vm9254_vm0, %v9255_v6 }
 0x151   :  { %8940 = vmatprep.subr.bf16.mxu0 %v9253_v3 }
 0x155   :  { %8104 = vmatmul.mubr.f32.vlgmr.msra.gmra.mrb[0].mxu1 %v639_v19 }
 0x156   :  { %8744 = vmatpush3.bf16.msra.mxu1 %v9409_v16  ;;  %8566 = vmatmul.mubr.f32.vlgmr.msra.gmra.mrb[12].mxu0 %v9321_v12 }
 0x157   :  { %8942 = vmatpush3.bf16.msra.mxu0 %v8932_v22  ;;  %8110 = vmatprep.mubr.msk.f32.mxu1 %vm9254_vm0, %v9255_v6 }
 0x158   :  { %8745 = vmatprep.subr.bf16.mxu1 %v9253_v3  ;;  %8572 = vmatprep.mubr.msk.f32.mxu0 %vm9254_vm0, %v9255_v6 }
 0x159   :  { %8943 = vmatprep.subr.bf16.mxu0 %v9253_v3 }
 0x15d   :  { %8111 = vmatmul.mubr.f32.vlgmr.msra.gmra.mrb[0].mxu1 %v640_v20 }
 0x15e   :  { %8747 = vmatpush3.bf16.msra.mxu1 %v9433_v36  ;;  %8573 = vmatmul.mubr.f32.vlgmr.msra.gmra.mrb[12].mxu0 %v9325_v15 }
 0x15f   :  { %8945 = vmatpush3.bf16.msra.mxu0 %v8944_v33  ;;  %8117 = vmatprep.mubr.msk.f32.mxu1 %vm9254_vm0, %v9255_v6 }
 0x160   :  { %8748 = vmatprep.subr.bf16.mxu1 %v9253_v3  ;;  %8579 = vmatprep.mubr.msk.f32.mxu0 %vm9254_vm0, %v9255_v6 }
 0x161   :  { %8946 = vmatprep.subr.bf16.mxu0 %v9253_v3 }
 0x165   :  { %8118 = vmatmul.mubr.f32.vlgmr.msra.gmra.mrb[0].mxu1 %v9485_v14  ;;  %v1488_v41 = vpop.f32.mrb[2].mxu0 }
 0x166   :  { %v1493_v42 = vsel %vm105_vm1, %v1488_v41, 0  ;;  %8750 = vmatpush3.bf16.msra.mxu1 %v9409_v16  ;;  %v8168_v43 = vpop.f32.mrb[3].mxu0  ;;  %8580 = vmatmul.mubr.f32.vlgmr.msra.gmra.mrb[12].mxu0 %v9318_v11  ;;  %v3802_v41 = vstv %s9717_s2 }
 0x167   :  { %v9535_v44 = vand.u32 4294901760, %v1493_v42  ;;  %8948 = vmatpush3.bf16.msra.mxu0 %v8932_v22  ;;  %8124 = vmatprep.mubr.msk.f32.mxu1 %vm9254_vm0, %v9255_v6  ;;  %v3832_v43 = vstv %s9721_s20 }
 0x168   :  { %8769 = vmatprep.subr.bf16.mxu1 %v9253_v3  ;;  %8586 = vmatprep.mubr.msk.f32.mxu0 %vm9254_vm0, %v9255_v6 }
 0x169   :  { %v1563_v47 = vsub.f32 %v1493_v42, %v9535_v44  ;;  %8967 = vmatprep.subr.bf16.mxu0 %v9253_v3  ;;  %v3817_v42 = vstv %s9719_s19 }
 0x16b   :  { %v1564_v48 = vand.u32 4294901760, %v1563_v47 }
 0x16d   :  { %v1565_v52 = vsub.f32 %v1563_v47, %v1564_v48  ;;  %8125 = vmatmul.mubr.f32.vlgmr.msra.gmra.mrb[0].mxu1 %v9485_v14 }
 0x16e   :  { %8771 = vmatpush3.bf16.msra.mxu1 %v9409_v16  ;;  %8587 = vmatmul.mubr.f32.vlgmr.msra.gmra.mrb[12].mxu0 %v9318_v11 }
 0x16f   :  { %v1566_v53 = vand.u32 4294901760, %v1565_v52  ;;  %8969 = vmatpush3.bf16.msra.mxu0 %v8968_v49  ;;  %8173 = vmatprep.mubr.msk.f32.mxu1 %vm9254_vm0, %v9255_v6  ;;  %v3849_v52 = vstv %s9743_s29 }
 0x170   :  { %8772 = vmatprep.subr.bf16.mxu1 %v9253_v3  ;;  %8635 = vmatprep.mubr.msk.f32.mxu0 %vm9254_vm0, %v9255_v6 }
 0x171   :  { %8174 = vmatmul.mubr.f32.vlgmr.msra.gmra.mrb[2].mxu1 %v1566_v53  ;;  %8970 = vmatprep.subr.bf16.mxu0 %v9253_v3  ;;  %v3864_v53 = vstv %s9745_s30 }
 0x172   :  { %8774 = vmatpush3.bf16.msra.mxu1 %v9417_v27  ;;  %8636 = vmatmul.mubr.f32.vlgmr.msra.gmra.mrb[14].mxu0 %v9329_v21  ;;  %v8980_v21 = vpack.c.bf16 %v6784_v40, %v6777_v39 }
 0x173   :  { %8972 = vmatpush3.bf16.msra.mxu0 %v8971_v54  ;;  %8180 = vmatprep.mubr.msk.f32.mxu1 %vm9254_vm0, %v9255_v6  ;;  %v3879_v54 = vstv %s9747_s7 }
 0x174   :  { %8775 = vmatprep.subr.bf16.mxu1 %v9253_v3  ;;  %8642 = vmatprep.mubr.msk.f32.mxu0 %vm9254_vm0, %v9255_v6 }
 0x175   :  { %8973 = vmatprep.subr.bf16.mxu0 %v9253_v3 }
 0x179   :  { %8181 = vmatmul.mubr.f32.vlgmr.msra.gmra.mrb[2].mxu1 %v9535_v44 }
 0x17a   :  { %8777 = vmatpush3.bf16.msra.mxu1 %v9423_v28  ;;  %8643 = vmatmul.mubr.f32.vlgmr.msra.gmra.mrb[14].mxu0 %v9318_v11 }
 0x17b   :  { %8975 = vmatpush3.bf16.msra.mxu0 %v8974_v55  ;;  %8187 = vmatprep.mubr.msk.f32.mxu1 %vm9254_vm0, %v9255_v6  ;;  %v3894_v55 = vstv %s9749_s8 }
 0x17c   :  { %8778 = vmatprep.subr.bf16.mxu1 %v9253_v3  ;;  %8649 = vmatprep.mubr.msk.f32.mxu0 %vm9254_vm0, %v9255_v6 }
 0x17d   :  { %8976 = vmatprep.subr.bf16.mxu0 %v9253_v3 }
 0x181   :  { %8188 = vmatmul.mubr.f32.vlgmr.msra.gmra.mrb[2].mxu1 %v1563_v47  ;;  %v3892_v47 = vstv %s9729_s24 }
 0x182   :  { %8780 = vmatpush3.bf16.msra.mxu1 %v9409_v16  ;;  %8650 = vmatmul.mubr.f32.vlgmr.msra.gmra.mrb[14].mxu0 %v9321_v12 }
 0x183   :  { %8978 = vmatpush3.bf16.msra.mxu0 %v8968_v49  ;;  %8194 = vmatprep.mubr.msk.f32.mxu1 %vm9254_vm0, %v9255_v6 }
 0x184   :  { %8781 = vmatprep.subr.bf16.mxu1 %v9253_v3  ;;  %8656 = vmatprep.mubr.msk.f32.mxu0 %vm9254_vm0, %v9255_v6 }
 0x185   :  { %8979 = vmatprep.subr.bf16.mxu0 %v9253_v3 }
 0x189   :  { %8195 = vmatmul.mubr.f32.vlgmr.msra.gmra.mrb[2].mxu1 %v1564_v48  ;;  %v3907_v48 = vstv %s9731_s25 }
 0x18a   :  { %8783 = vmatpush3.bf16.msra.mxu1 %v9433_v36  ;;  %8657 = vmatmul.mubr.f32.vlgmr.msra.gmra.mrb[14].mxu0 %v9325_v15 }
 0x18b   :  { %8981 = vmatpush3.bf16.msra.mxu0 %v8980_v21  ;;  %8201 = vmatprep.mubr.msk.f32.mxu1 %vm9254_vm0, %v9255_v6  ;;  %v3909_v21 = vstv %s9751_s9  ;;  %s9925_s9 = sld [smem:[#allocation7 + $0x7]] }
 0x18c   :  { %8784 = vmatprep.subr.bf16.mxu1 %v9253_v3  ;;  %8663 = vmatprep.mubr.msk.f32.mxu0 %vm9254_vm0, %v9255_v6 }
 0x18d   :  { %8982 = vmatprep.subr.bf16.mxu0 %v9253_v3 }
 0x191   :  { %8202 = vmatmul.mubr.f32.vlgmr.msra.gmra.mrb[2].mxu1 %v9535_v44  ;;  %v2412_v12 = vpop.f32.mrb[4].mxu0  ;;  %10120 = sst [smem:[#allocation23_spill]] %s9925_s9 }
 0x192   :  { %v2417_v56 = vsel %vm105_vm1, %v2412_v12, 0  ;;  %8786 = vmatpush3.bf16.msra.mxu1 %v9409_v16  ;;  %v8252_v57 = vpop.f32.mrb[5].mxu0  ;;  %8664 = vmatmul.mubr.f32.vlgmr.msra.gmra.mrb[14].mxu0 %v9318_v11 }
 0x193   :  { %v2486_v15 = vand.u32 4294901760, %v2417_v56  ;;  %8984 = vmatpush3.bf16.msra.mxu0 %v8968_v49  ;;  %8208 = vmatprep.mubr.msk.f32.mxu1 %vm9254_vm0, %v9255_v6  ;;  %v3804_v49 = vstv %s9736_s26 }
 0x194   :  { %8805 = vmatprep.subr.bf16.mxu1 %v9253_v3  ;;  %8670 = vmatprep.mubr.msk.f32.mxu0 %vm9254_vm0, %v9255_v6 }
 0x195   :  { %v2487_v58 = vsub.f32 %v2417_v56, %v2486_v15 }
 0x197   :  { %v2488_v59 = vand.u32 4294901760, %v2487_v58 }
 0x199   :  { %v2489_v60 = vsub.f32 %v2487_v58, %v2488_v59  ;;  %8209 = vmatmul.mubr.f32.vlgmr.msra.gmra.mrb[2].mxu1 %v9535_v44  ;;  %v3847_v44 = vstv %s9723_s21 }
 0x19a   :  { %8807 = vmatpush3.bf16.msra.mxu1 %v9409_v16  ;;  %8671 = vmatmul.mubr.f32.vlgmr.msra.gmra.mrb[14].mxu0 %v9318_v11 }
 0x19b   :  { %v2490_v61 = vand.u32 4294901760, %v2489_v60  ;;  %8257 = vmatprep.mubr.msk.f32.mxu1 %vm9254_vm0, %v9255_v6  ;;  %8808 = vmatprep.subr.bf16.mxu1 %v9253_v3 }
 0x19d   :  { %8258 = vmatmul.mubr.f32.vlgmr.msra.gmra.mrb[4].mxu1 %v2490_v61 }
 0x19e   :  { %8810 = vmatpush3.bf16.msra.mxu1 %v9417_v27  ;;  %8264 = vmatprep.mubr.msk.f32.mxu1 %vm9254_vm0, %v9255_v6 }
 0x19f   :  { %8811 = vmatprep.subr.bf16.mxu1 %v9253_v3 }
 0x1a5   :  { %8265 = vmatmul.mubr.f32.vlgmr.msra.gmra.mrb[4].mxu1 %v2486_v15 }
 0x1a6   :  { %8813 = vmatpush3.bf16.msra.mxu1 %v9423_v28  ;;  %8271 = vmatprep.mubr.msk.f32.mxu1 %vm9254_vm0, %v9255_v6 }
 0x1a7   :  { %8814 = vmatprep.subr.bf16.mxu1 %v9253_v3 }
 0x1ad   :  { %8272 = vmatmul.mubr.f32.vlgmr.msra.gmra.mrb[4].mxu1 %v2487_v58 }
 0x1ae   :  { %8816 = vmatpush3.bf16.msra.mxu1 %v9409_v16  ;;  %8278 = vmatprep.mubr.msk.f32.mxu1 %vm9254_vm0, %v9255_v6 }
 0x1af   :  { %8817 = vmatprep.subr.bf16.mxu1 %v9253_v3 }
 0x1b5   :  { %8279 = vmatmul.mubr.f32.vlgmr.msra.gmra.mrb[4].mxu1 %v2488_v59 }
 0x1b6   :  { %8819 = vmatpush3.bf16.msra.mxu1 %v9433_v36  ;;  %8285 = vmatprep.mubr.msk.f32.mxu1 %vm9254_vm0, %v9255_v6 }
 0x1b7   :  { %8820 = vmatprep.subr.bf16.mxu1 %v9253_v3 }
 0x1bd   :  { %8286 = vmatmul.mubr.f32.vlgmr.msra.gmra.mrb[4].mxu1 %v2486_v15  ;;  %v3336_v11 = vpop.f32.mrb[6].mxu0 }
 0x1be   :  { %v3341_v62 = vsel %vm105_vm1, %v3336_v11, 0  ;;  %8822 = vmatpush3.bf16.msra.mxu1 %v9409_v16  ;;  %v8336_v63 = vpop.f32.mrb[7].mxu0  ;;  %8292 = vmatprep.mubr.msk.f32.mxu1 %vm9254_vm0, %v9255_v6 }
 0x1bf   :  { %v3410_v0 = vand.u32 4294901760, %v3341_v62  ;;  %8841 = vmatprep.subr.bf16.mxu1 %v9253_v3 }
 0x1c1   :  { %v3411_v1 = vsub.f32 %v3341_v62, %v3410_v0 }
 0x1c3   :  { %v3412_v2 = vand.u32 4294901760, %v3411_v1 }
 0x1c5   :  { %v3413_v4 = vsub.f32 %v3411_v1, %v3412_v2  ;;  %8293 = vmatmul.mubr.f32.vlgmr.msra.gmra.mrb[4].mxu1 %v2486_v15 }
 0x1c6   :  { %8843 = vmatpush3.bf16.msra.mxu1 %v9409_v16  ;;  %8341 = vmatprep.mubr.msk.f32.mxu1 %vm9254_vm0, %v9255_v6 }
 0x1c7   :  { %v3414_v5 = vand.u32 4294901760, %v3413_v4  ;;  %8844 = vmatprep.subr.bf16.mxu1 %v9253_v3 }
 0x1c9   :  { %8342 = vmatmul.mubr.f32.vlgmr.msra.gmra.mrb[6].mxu1 %v3414_v5 }
 0x1ca   :  { %8846 = vmatpush3.bf16.msra.mxu1 %v9417_v27  ;;  %8348 = vmatprep.mubr.msk.f32.mxu1 %vm9254_vm0, %v9255_v6 }
 0x1cb   :  { %8847 = vmatprep.subr.bf16.mxu1 %v9253_v3 }
 0x1d1   :  { %8349 = vmatmul.mubr.f32.vlgmr.msra.gmra.mrb[6].mxu1 %v3410_v0 }
 0x1d2   :  { %8849 = vmatpush3.bf16.msra.mxu1 %v9423_v28  ;;  %8355 = vmatprep.mubr.msk.f32.mxu1 %vm9254_vm0, %v9255_v6 }
 0x1d3   :  { %8850 = vmatprep.subr.bf16.mxu1 %v9253_v3 }
 0x1d9   :  { %8356 = vmatmul.mubr.f32.vlgmr.msra.gmra.mrb[6].mxu1 %v3411_v1 }
 0x1da   :  { %8852 = vmatpush3.bf16.msra.mxu1 %v9409_v16  ;;  %8362 = vmatprep.mubr.msk.f32.mxu1 %vm9254_vm0, %v9255_v6 }
 0x1db   :  { %8853 = vmatprep.subr.bf16.mxu1 %v9253_v3 }
 0x1e1   :  { %8363 = vmatmul.mubr.f32.vlgmr.msra.gmra.mrb[6].mxu1 %v3412_v2 }
 0x1e2   :  { %8855 = vmatpush3.bf16.msra.mxu1 %v9433_v36  ;;  %8369 = vmatprep.mubr.msk.f32.mxu1 %vm9254_vm0, %v9255_v6 }
 0x1e3   :  { %8856 = vmatprep.subr.bf16.mxu1 %v9253_v3 }
 0x1e9   :  { %8370 = vmatmul.mubr.f32.vlgmr.msra.gmra.mrb[6].mxu1 %v3410_v0  ;;  %v4380_v7 = vpop.f32.mrb[8].mxu0 }
 0x1ea   :  { %v4385_v8 = vsel %vm105_vm1, %v4380_v7, 0  ;;  %8858 = vmatpush3.bf16.msra.mxu1 %v9409_v16  ;;  %v8420_v9 = vpop.f32.mrb[9].mxu0  ;;  %8376 = vmatprep.mubr.msk.f32.mxu1 %vm9254_vm0, %v9255_v6 }
 0x1eb   :  { %v4454_v10 = vand.u32 4294901760, %v4385_v8  ;;  %8877 = vmatprep.subr.bf16.mxu1 %v9253_v3 }
 0x1ed   :  { %v4455_v13 = vsub.f32 %v4385_v8, %v4454_v10 }
 0x1ef   :  { %v4456_v14 = vand.u32 4294901760, %v4455_v13 }
 0x1f1   :  { %v4457_v17 = vsub.f32 %v4455_v13, %v4456_v14  ;;  %8377 = vmatmul.mubr.f32.vlgmr.msra.gmra.mrb[6].mxu1 %v3410_v0 }
 0x1f2   :  { %8879 = vmatpush3.bf16.msra.mxu1 %v9409_v16  ;;  %8425 = vmatprep.mubr.msk.f32.mxu1 %vm9254_vm0, %v9255_v6 }
 0x1f3   :  { %v4458_v18 = vand.u32 4294901760, %v4457_v17  ;;  %8880 = vmatprep.subr.bf16.mxu1 %v9253_v3 }
 0x1f5   :  { %8426 = vmatmul.mubr.f32.vlgmr.msra.gmra.mrb[8].mxu1 %v4458_v18 }
 0x1f6   :  { %8882 = vmatpush3.bf16.msra.mxu1 %v9417_v27  ;;  %8432 = vmatprep.mubr.msk.f32.mxu1 %vm9254_vm0, %v9255_v6 }
 0x1f7   :  { %8883 = vmatprep.subr.bf16.mxu1 %v9253_v3 }
 0x1fd   :  { %8433 = vmatmul.mubr.f32.vlgmr.msra.gmra.mrb[8].mxu1 %v4454_v10 }
 0x1fe   :  { %8885 = vmatpush3.bf16.msra.mxu1 %v9423_v28  ;;  %8439 = vmatprep.mubr.msk.f32.mxu1 %vm9254_vm0, %v9255_v6 }
 0x1ff   :  { %8886 = vmatprep.subr.bf16.mxu1 %v9253_v3 }
 0x205   :  { %8440 = vmatmul.mubr.f32.vlgmr.msra.gmra.mrb[8].mxu1 %v4455_v13 }
 0x206   :  { %8888 = vmatpush3.bf16.msra.mxu1 %v9409_v16  ;;  %8446 = vmatprep.mubr.msk.f32.mxu1 %vm9254_vm0, %v9255_v6 }
 0x207   :  { %8889 = vmatprep.subr.bf16.mxu1 %v9253_v3 }
 0x20d   :  { %8447 = vmatmul.mubr.f32.vlgmr.msra.gmra.mrb[8].mxu1 %v4456_v14 }
 0x20e   :  { %8891 = vmatpush3.bf16.msra.mxu1 %v9433_v36  ;;  %8453 = vmatprep.mubr.msk.f32.mxu1 %vm9254_vm0, %v9255_v6 }
 0x20f   :  { %8892 = vmatprep.subr.bf16.mxu1 %v9253_v3 }
 0x215   :  { %8454 = vmatmul.mubr.f32.vlgmr.msra.gmra.mrb[8].mxu1 %v4454_v10  ;;  %v5304_v19 = vpop.f32.mrb[10].mxu0 }
 0x216   :  { %v5309_v20 = vsel %vm105_vm1, %v5304_v19, 0  ;;  %8894 = vmatpush3.bf16.msra.mxu1 %v9409_v16  ;;  %v8504_v22 = vpop.f32.mrb[11].mxu0  ;;  %8460 = vmatprep.mubr.msk.f32.mxu1 %vm9254_vm0, %v9255_v6 }
 0x217   :  { %v5378_v23 = vand.u32 4294901760, %v5309_v20  ;;  %8913 = vmatprep.subr.bf16.mxu1 %v9253_v3 }
 0x219   :  { %v5379_v24 = vsub.f32 %v5309_v20, %v5378_v23 }
 0x21b   :  { %v5380_v25 = vand.u32 4294901760, %v5379_v24 }
 0x21d   :  { %v5381_v26 = vsub.f32 %v5379_v24, %v5380_v25  ;;  %8461 = vmatmul.mubr.f32.vlgmr.msra.gmra.mrb[8].mxu1 %v4454_v10 }
 0x21e   :  { %8915 = vmatpush3.bf16.msra.mxu1 %v9409_v16  ;;  %8509 = vmatprep.mubr.msk.f32.mxu1 %vm9254_vm0, %v9255_v6 }
 0x21f   :  { %v5382_v29 = vand.u32 4294901760, %v5381_v26  ;;  %8916 = vmatprep.subr.bf16.mxu1 %v9253_v3 }
 0x221   :  { %8510 = vmatmul.mubr.f32.vlgmr.msra.gmra.mrb[10].mxu1 %v5382_v29 }
 0x222   :  { %8918 = vmatpush3.bf16.msra.mxu1 %v9417_v27  ;;  %8516 = vmatprep.mubr.msk.f32.mxu1 %vm9254_vm0, %v9255_v6 }
 0x223   :  { %8919 = vmatprep.subr.bf16.mxu1 %v9253_v3 }
 0x229   :  { %8517 = vmatmul.mubr.f32.vlgmr.msra.gmra.mrb[10].mxu1 %v5378_v23 }
 0x22a   :  { %8921 = vmatpush3.bf16.msra.mxu1 %v9423_v28  ;;  %8523 = vmatprep.mubr.msk.f32.mxu1 %vm9254_vm0, %v9255_v6 }
 0x22b   :  { %8922 = vmatprep.subr.bf16.mxu1 %v9253_v3 }
 0x231   :  { %8524 = vmatmul.mubr.f32.vlgmr.msra.gmra.mrb[10].mxu1 %v5379_v24 }
 0x232   :  { %8924 = vmatpush3.bf16.msra.mxu1 %v9409_v16  ;;  %8530 = vmatprep.mubr.msk.f32.mxu1 %vm9254_vm0, %v9255_v6 }
 0x233   :  { %8925 = vmatprep.subr.bf16.mxu1 %v9253_v3 }
 0x239   :  { %8531 = vmatmul.mubr.f32.vlgmr.msra.gmra.mrb[10].mxu1 %v5380_v25 }
 0x23a   :  { %8927 = vmatpush3.bf16.msra.mxu1 %v9433_v36  ;;  %8537 = vmatprep.mubr.msk.f32.mxu1 %vm9254_vm0, %v9255_v6 }
 0x23b   :  { %8928 = vmatprep.subr.bf16.mxu1 %v9253_v3 }
 0x240   :  { %v9694_v30 = vpop.f32.mrb[0].mxu1 }
 0x241   :  { %v8126_v31 = vpop.f32.mrb[1].mxu1  ;;  %8538 = vmatmul.mubr.f32.vlgmr.msra.gmra.mrb[10].mxu1 %v5378_v23  ;;  %v6228_v32 = vpop.f32.mrb[12].mxu0  ;;  %v3803_v12 = vmul.f32 %v3802_v41, %v9694_v30  ;;  %v3818_v56 = vmul.f32 %v3817_v42, %v9694_v30  ;;  %v3833_v57 = vmul.f32 %v3832_v43, %v9694_v30  ;;  %v3848_v15 = vmul.f32 %v3847_v44, %v9694_v30 }
 0x242   :  { %8930 = vmatpush3.bf16.msra.mxu1 %v9409_v16  ;;  %v8588_v33 = vpop.f32.mrb[13].mxu0  ;;  %v6233_v34 = vsel %vm105_vm1, %v6228_v32, 0  ;;  %8544 = vmatprep.mubr.msk.f32.mxu1 %vm9254_vm0, %v9255_v6  ;;  %v3863_v58 = vmul.f32 %v3862_v45, %v9694_v30  ;;  %v3878_v59 = vmul.f32 %v3877_v46, %v9694_v30  ;;  %v3893_v60 = vmul.f32 %v3892_v47, %v9694_v30 }
 0x243   :  { %8949 = vmatprep.subr.bf16.mxu1 %v9253_v3  ;;  %v9701_v35 = vand.u32 4294901760, %v6233_v34  ;;  %v3908_v61 = vmul.f32 %v3907_v48, %v9694_v30  ;;  %v3837_v32 = vstv %s9847_s12  ;;  %v3852_v33 = vstv %s9849_s13  ;;  %s9917_s13 = sld [smem:[#allocation7 + $0x3]]  ;;  %s9919_s12 = sld [smem:[#allocation7 + $0x4]] }
 0x245   :  { %v6303_v37 = vsub.f32 %v6233_v34, %v9701_v35  ;;  %v3867_v34 = vstv %s9852_s14  ;;  %s9915_s14 = sld [smem:[#allocation7 + $0x2]] }
 0x247   :  { %v6304_v38 = vand.u32 4294901760, %v6303_v37 }
 0x249   :  { %8545 = vmatmul.mubr.f32.vlgmr.msra.gmra.mrb[10].mxu1 %v5378_v23  ;;  %v6305_v39 = vsub.f32 %v6303_v37, %v6304_v38 }
 0x24a   :  { %8951 = vmatpush3.bf16.msra.mxu1 %v9409_v16  ;;  %8593 = vmatprep.mubr.msk.f32.mxu1 %vm9254_vm0, %v9255_v6 }
 0x24b   :  { %8952 = vmatprep.subr.bf16.mxu1 %v9253_v3  ;;  %v6306_v40 = vand.u32 4294901760, %v6305_v39 }
 0x24d   :  { %8594 = vmatmul.mubr.f32.vlgmr.msra.gmra.mrb[12].mxu1 %v6306_v40 }
 0x24e   :  { %8954 = vmatpush3.bf16.msra.mxu1 %v9417_v27  ;;  %8600 = vmatprep.mubr.msk.f32.mxu1 %vm9254_vm0, %v9255_v6 }
 0x24f   :  { %8955 = vmatprep.subr.bf16.mxu1 %v9253_v3 }
 0x255   :  { %8601 = vmatmul.mubr.f32.vlgmr.msra.gmra.mrb[12].mxu1 %v9701_v35 }
 0x256   :  { %8957 = vmatpush3.bf16.msra.mxu1 %v9423_v28  ;;  %8607 = vmatprep.mubr.msk.f32.mxu1 %vm9254_vm0, %v9255_v6 }
 0x257   :  { %8958 = vmatprep.subr.bf16.mxu1 %v9253_v3 }
 0x25d   :  { %8608 = vmatmul.mubr.f32.vlgmr.msra.gmra.mrb[12].mxu1 %v6303_v37  ;;  %v3897_v37 = vstv %s9856_s4  ;;  %s9911_s4 = sld [smem:[#allocation7]] }
 0x25e   :  { %8960 = vmatpush3.bf16.msra.mxu1 %v9409_v16  ;;  %8614 = vmatprep.mubr.msk.f32.mxu1 %vm9254_vm0, %v9255_v6 }
 0x25f   :  { %8961 = vmatprep.subr.bf16.mxu1 %v9253_v3 }
 0x265   :  { %8615 = vmatmul.mubr.f32.vlgmr.msra.gmra.mrb[12].mxu1 %v6304_v38  ;;  %v3912_v38 = vstv %s9858_s15  ;;  %s9909_s15 = sld [smem:[#allocation6 + $0x383]] }
 0x266   :  { %8963 = vmatpush3.bf16.msra.mxu1 %v9433_v36  ;;  %8621 = vmatprep.mubr.msk.f32.mxu1 %vm9254_vm0, %v9255_v6 }
 0x267   :  { %8964 = vmatprep.subr.bf16.mxu1 %v9253_v3 }
 0x26c   :  { %v1950_v11 = vpop.f32.mrb[2].mxu1 }
 0x26d   :  { %v3805_v62 = vmul.f32 %v3804_v49, %v1950_v11  ;;  %v3820_v63 = vmul.f32 %v3819_v50, %v1950_v11  ;;  %v3835_v0 = vmul.f32 %v3834_v51, %v1950_v11  ;;  %v3850_v1 = vmul.f32 %v3849_v52, %v1950_v11  ;;  %v8210_v2 = vpop.f32.mrb[3].mxu1  ;;  %v7152_v4 = vpop.f32.mrb[14].mxu0  ;;  %8622 = vmatmul.mubr.f32.vlgmr.msra.gmra.mrb[12].mxu1 %v9701_v35 }
 0x26e   :  { %v3865_v5 = vmul.f32 %v3864_v53, %v1950_v11  ;;  %v3880_v7 = vmul.f32 %v3879_v54, %v1950_v11  ;;  %v3895_v8 = vmul.f32 %v3894_v55, %v1950_v11  ;;  %v3910_v9 = vmul.f32 %v3909_v21, %v1950_v11  ;;  %v8672_v10 = vpop.f32.mrb[15].mxu0  ;;  %8966 = vmatpush3.bf16.msra.mxu1 %v9409_v16 }
 0x26f   :  { %v9814_v13 = vadd.f32 %v3805_v62, %v3803_v12  ;;  %v9816_v14 = vadd.f32 %v3820_v63, %v3818_v56  ;;  %v9818_v17 = vadd.f32 %v3835_v0, %v3833_v57  ;;  %v9820_v18 = vadd.f32 %v3850_v1, %v3848_v15  ;;  %8628 = vmatprep.mubr.msk.f32.mxu1 %vm9254_vm0, %v9255_v6 }
 0x270   :  { %v3866_v19 = vadd.f32 %v3865_v5, %v3863_v58  ;;  %v3881_v20 = vadd.f32 %v3880_v7, %v3878_v59  ;;  %v3896_v22 = vadd.f32 %v3895_v8, %v3893_v60  ;;  %v3911_v23 = vadd.f32 %v3910_v9, %v3908_v61  ;;  %8985 = vmatprep.subr.bf16.mxu1 %v9253_v3 }
 0x271   :  { %v7157_v24 = vsel %vm105_vm1, %v7152_v4, 0  ;;  %v3825_v4 = vstv %s9897_s16  ;;  %v10106_v5 = vstv %s9899_s17  ;;  %v10104_v7 = vstv %s9901_s18 }
 0x272   :  { %v7226_v25 = vand.u32 4294901760, %v7157_v24  ;;  %v10105_v8 = vstv %s9903_s3  ;;  %v10107_v9 = vstv %s9905_s6  ;;  %v10108_v10 = vstv %s9907_s5 }
 0x274   :  { %v7227_v26 = vsub.f32 %v7157_v24, %v7226_v25  ;;  %v3918_v24 = vstv %s9925_s9 }
 0x275   :  { %8629 = vmatmul.mubr.f32.vlgmr.msra.gmra.mrb[12].mxu1 %v9701_v35  ;;  %v3882_v35 = vstv %s9854_s0  ;;  %s9913_s0 = sld [smem:[#allocation7 + $0x1]] }
 0x276   :  { %v7228_v29 = vand.u32 4294901760, %v7227_v26  ;;  %8987 = vmatpush3.bf16.msra.mxu1 %v9409_v16  ;;  %8677 = vmatprep.mubr.msk.f32.mxu1 %vm9254_vm0, %v9255_v6 }
 0x277   :  { %8988 = vmatprep.subr.bf16.mxu1 %v9253_v3 }
 0x278   :  { %v7229_v30 = vsub.f32 %v7227_v26, %v7228_v29 }
 0x27a   :  { %v7230_v31 = vand.u32 4294901760, %v7229_v30 }
 0x27c   :  { %8678 = vmatmul.mubr.f32.vlgmr.msra.gmra.mrb[14].mxu1 %v7230_v31 }
 0x27d   :  { %8990 = vmatpush3.bf16.msra.mxu1 %v9417_v27  ;;  %8684 = vmatprep.mubr.msk.f32.mxu1 %vm9254_vm0, %v9255_v6  ;;  %v3807_v27 = vstv %s9840_s10  ;;  %s9923_s10 = sld [smem:[#allocation7 + $0x6]] }
 0x27e   :  { %8991 = vmatprep.subr.bf16.mxu1 %v9253_v3 }
 0x284   :  { %8685 = vmatmul.mubr.f32.vlgmr.msra.gmra.mrb[14].mxu1 %v7226_v25 }
 0x285   :  { %8993 = vmatpush3.bf16.msra.mxu1 %v9423_v28  ;;  %8691 = vmatprep.mubr.msk.f32.mxu1 %vm9254_vm0, %v9255_v6  ;;  %v3822_v28 = vstv %s9842_s11  ;;  %s9921_s11 = sld [smem:[#allocation7 + $0x5]] }
 0x286   :  { %8994 = vmatprep.subr.bf16.mxu1 %v9253_v3 }
 0x28c   :  { %8692 = vmatmul.mubr.f32.vlgmr.msra.gmra.mrb[14].mxu1 %v7227_v26 }
 0x28d   :  { %8996 = vmatpush3.bf16.msra.mxu1 %v9409_v16  ;;  %8698 = vmatprep.mubr.msk.f32.mxu1 %vm9254_vm0, %v9255_v6 }
 0x28e   :  { %8997 = vmatprep.subr.bf16.mxu1 %v9253_v3 }
 0x294   :  { %8699 = vmatmul.mubr.f32.vlgmr.msra.gmra.mrb[14].mxu1 %v7228_v29 }
 0x295   :  { %8999 = vmatpush3.bf16.msra.mxu1 %v9433_v36  ;;  %8705 = vmatprep.mubr.msk.f32.mxu1 %vm9254_vm0, %v9255_v6 }
 0x296   :  { %9000 = vmatprep.subr.bf16.mxu1 %v9253_v3 }
 0x298   :  { %v2874_v39 = vpop.f32.mrb[4].mxu1 }
 0x299   :  { %v3808_v36 = vmul.f32 %v3807_v27, %v2874_v39  ;;  %v3823_v40 = vmul.f32 %v3822_v28, %v2874_v39  ;;  %v3838_v12 = vmul.f32 %v3837_v32, %v2874_v39  ;;  %v3853_v56 = vmul.f32 %v3852_v33, %v2874_v39  ;;  %v8294_v57 = vpop.f32.mrb[5].mxu1 }
 0x29a   :  { %v3868_v15 = vmul.f32 %v3867_v34, %v2874_v39  ;;  %v3883_v58 = vmul.f32 %v3882_v35, %v2874_v39  ;;  %v3898_v3 = vmul.f32 %v3897_v37, %v2874_v39  ;;  %v3913_v59 = vmul.f32 %v3912_v38, %v2874_v39 }
 0x29b   :  { %v3809_v60 = vadd.f32 %v3808_v36, %v9814_v13  ;;  %v3824_v61 = vadd.f32 %v3823_v40, %v9816_v14  ;;  %v3839_v11 = vadd.f32 %v3838_v12, %v9818_v17  ;;  %v3854_v62 = vadd.f32 %v3853_v56, %v9820_v18 }
 0x29c   :  { %v3869_v63 = vadd.f32 %v3868_v15, %v3866_v19  ;;  %v3884_v0 = vadd.f32 %v3883_v58, %v3881_v20  ;;  %v3899_v1 = vadd.f32 %v3898_v3, %v3896_v22  ;;  %v3914_v2 = vadd.f32 %v3913_v59, %v3911_v23  ;;  %8706 = vmatmul.mubr.f32.vlgmr.msra.gmra.mrb[14].mxu1 %v7226_v25 }
 0x29d   :  { %9002 = vmatpush3.bf16.msra.mxu1 %v9409_v16  ;;  %8712 = vmatprep.mubr.msk.f32.mxu1 %vm9254_vm0, %v9255_v6  ;;  %v3810_v6 = vstv %s9895_s1  ;;  %v3813_v16 = vstv %s9911_s4  ;;  %v3828_v13 = vstv %s9913_s0  ;;  %v3843_v14 = vstv %s9915_s14 }
 0x29e   :  { %v3858_v17 = vstv %s9917_s13  ;;  %v3915_v18 = vstv %s9909_s15  ;;  %v3873_v20 = vstv %s9919_s12  ;;  %v3888_v22 = vstv %s9921_s11 }
 0x29f   :  { %v3903_v23 = vstv %s9923_s10 }
 0x2a4   :  { %8713 = vmatmul.mubr.f32.vlgmr.msra.gmra.mrb[14].mxu1 %v7226_v25 }
 0x2c4   :  { %v3798_v19 = vpop.f32.mrb[6].mxu1 }
 0x2c5   :  { %v3811_v25 = vmul.f32 %v3810_v6, %v3798_v19  ;;  %v3826_v26 = vmul.f32 %v3825_v4, %v3798_v19  ;;  %v3841_v29 = vmul.f32 %v10106_v5, %v3798_v19  ;;  %v3856_v30 = vmul.f32 %v10104_v7, %v3798_v19  ;;  %v8378_v31 = vpop.f32.mrb[7].mxu1 }
 0x2c6   :  { %v3871_v39 = vmul.f32 %v10105_v8, %v3798_v19  ;;  %v3886_v36 = vmul.f32 %v10107_v9, %v3798_v19  ;;  %v3901_v40 = vmul.f32 %v10108_v10, %v3798_v19  ;;  %v3916_v12 = vmul.f32 %v3915_v18, %v3798_v19 }
 0x2c7   :  { %v3812_v56 = vadd.f32 %v3811_v25, %v3809_v60  ;;  %v3827_v57 = vadd.f32 %v3826_v26, %v3824_v61  ;;  %v3842_v15 = vadd.f32 %v3841_v29, %v3839_v11  ;;  %v3857_v58 = vadd.f32 %v3856_v30, %v3854_v62 }
 0x2c8   :  { %v3872_v3 = vadd.f32 %v3871_v39, %v3869_v63  ;;  %v3887_v59 = vadd.f32 %v3886_v36, %v3884_v0  ;;  %v3902_v31 = vadd.f32 %v3901_v40, %v3899_v1  ;;  %v3917_v7 = vadd.f32 %v3916_v12, %v3914_v2 }
 0x2c9   :  { %v3814_v8 = vadd.f32 %v3813_v16, %v3812_v56  ;;  %v3829_v5 = vadd.f32 %v3828_v13, %v3827_v57  ;;  %v3844_v9 = vadd.f32 %v3843_v14, %v3842_v15  ;;  %v3859_v10 = vadd.f32 %v3858_v17, %v3857_v58 }
 0x2ca   :  { %v3874_v19 = vadd.f32 %v3873_v20, %v3872_v3  ;;  %v3889_v60 = vadd.f32 %v3888_v22, %v3887_v59  ;;  %v3904_v61 = vadd.f32 %v3903_v23, %v3902_v31  ;;  %v3919_v11 = vadd.f32 %v3918_v24, %v3917_v7 }
 0x2cb   :  { %3816 = vst.msk [vmem:[#allocation9] sm:$0xff] %vm3815_vm2, %v3814_v8  ;;  %3831 = vst.msk [vmem:[#allocation9 + $0x8] sm:$0xff] %vm3815_vm2, %v3829_v5 }
 0x2cc   :  { %3846 = vst.msk [vmem:[#allocation9 + $0x10] sm:$0xff] %vm3815_vm2, %v3844_v9  ;;  %3861 = vst.msk [vmem:[#allocation9 + $0x18] sm:$0xff] %vm3815_vm2, %v3859_v10 }
 0x2cd   :  { %3876 = vst.msk [vmem:[#allocation9 + $0x20] sm:$0xff] %vm3815_vm2, %v3874_v19  ;;  %3891 = vst.msk [vmem:[#allocation9 + $0x28] sm:$0xff] %vm3815_vm2, %v3889_v60 }
 0x2ce   :  { %3906 = vst.msk [vmem:[#allocation9 + $0x30] sm:$0xff] %vm3815_vm2, %v3904_v61  ;;  %3921 = vst.msk [vmem:[#allocation9 + $0x38] sm:$0xff] %vm3815_vm2, %v3919_v11  ;;  %v10131_v11 = vstv %s9901_s18 }
 0x2f0   :  { %v4842_v62 = vpop.f32.mrb[8].mxu1 }
 0x2f1   :  { %v8462_v63 = vpop.f32.mrb[9].mxu1  ;;  %v7618_v0 = vmul.f32 %v4842_v62, %v3802_v41  ;;  %v7628_v1 = vmul.f32 %v4842_v62, %v3817_v42  ;;  %v7638_v2 = vmul.f32 %v4842_v62, %v3832_v43  ;;  %v7648_v5 = vmul.f32 %v4842_v62, %v3847_v44 }
 0x2f2   :  { %v7658_v7 = vmul.f32 %v4842_v62, %v3862_v45  ;;  %v7668_v8 = vmul.f32 %v4842_v62, %v3877_v46  ;;  %v7678_v9 = vmul.f32 %v4842_v62, %v3892_v47  ;;  %v7688_v10 = vmul.f32 %v4842_v62, %v3907_v48 }
 0x2f3   :  { %v10132_v63 = vstv %s9903_s3  ;;  %s7703_s3 = sshll.u32 %s9256_s27, 4  ;;  %s7704_s3 = int_to_ptr.vmem [resolvable:$true] %s7703_s3 }
 0x2f4   :  { %p9223_p5 = scmp.lt.s32.totalorder %s7704_s3, %s7704_s3 }
 0x31c   :  { %v5766_v25 = vpop.f32.mrb[10].mxu1 }
 0x31d   :  { %v7619_v26 = vmul.f32 %v5766_v25, %v3804_v49  ;;  %v7629_v41 = vmul.f32 %v5766_v25, %v3819_v50  ;;  %v7639_v42 = vmul.f32 %v5766_v25, %v3834_v51  ;;  %v7649_v43 = vmul.f32 %v5766_v25, %v3849_v52  ;;  %v8546_v44 = vpop.f32.mrb[11].mxu1 }
 0x31e   :  { %v7659_v45 = vmul.f32 %v5766_v25, %v3864_v53  ;;  %v7669_v46 = vmul.f32 %v5766_v25, %v3879_v54  ;;  %v7679_v47 = vmul.f32 %v5766_v25, %v3894_v55  ;;  %v7689_v48 = vmul.f32 %v5766_v25, %v3909_v21 }
 0x31f   :  { %v7620_v49 = vadd.f32 %v7619_v26, %v7618_v0  ;;  %v7630_v50 = vadd.f32 %v7629_v41, %v7628_v1  ;;  %v7640_v51 = vadd.f32 %v7639_v42, %v7638_v2  ;;  %v7650_v52 = vadd.f32 %v7649_v43, %v7648_v5 }
 0x320   :  { %v7660_v29 = vadd.f32 %v7659_v45, %v7658_v7  ;;  %v7670_v30 = vadd.f32 %v7669_v46, %v7668_v8  ;;  %v7680_v39 = vadd.f32 %v7679_v47, %v7678_v9  ;;  %v7690_v36 = vadd.f32 %v7689_v48, %v7688_v10 }
 0x321   :  { %v10133_v1 = vstv %s9905_s6  ;;  %v10134_v5 = vstv %s9907_s5  ;;  %s9218_s5 = scalar_lea.vmem %s7704_s3, 2048 }
 0x322   :  { %p9219_p4 = scmp.ne.s32.totalorder %s7704_s3, %s9218_s5  ;;  %p9224_p6 = scmp.lt.s32.totalorder %s9218_s5, %s9218_s5 }
 0x324   :  { %p9225_p7 = por %p9224_p6, %p9223_p5 }
 0x326   :  { %p9226_p8 = pnand %p9225_p7, %p9219_p4 }
 0x348   :  { %v6690_v53 = vpop.f32.mrb[12].mxu1 }
 0x349   :  { %v7621_v40 = vmul.f32 %v6690_v53, %v3807_v27  ;;  %v7631_v54 = vmul.f32 %v6690_v53, %v3822_v28  ;;  %v7641_v55 = vmul.f32 %v6690_v53, %v3837_v32  ;;  %v7651_v21 = vmul.f32 %v6690_v53, %v3852_v33  ;;  %v8630_v12 = vpop.f32.mrb[13].mxu1 }
 0x34a   :  { %v7661_v56 = vmul.f32 %v6690_v53, %v3867_v34  ;;  %v7671_v57 = vmul.f32 %v6690_v53, %v3882_v35  ;;  %v7681_v15 = vmul.f32 %v6690_v53, %v3897_v37  ;;  %v7691_v27 = vmul.f32 %v6690_v53, %v3912_v38 }
 0x34b   :  { %v7622_v28 = vadd.f32 %v7621_v40, %v7620_v49  ;;  %v7632_v32 = vadd.f32 %v7631_v54, %v7630_v50  ;;  %v7642_v58 = vadd.f32 %v7641_v55, %v7640_v51  ;;  %v7652_v33 = vadd.f32 %v7651_v21, %v7650_v52 }
 0x34c   :  { %v7662_v3 = vadd.f32 %v7661_v56, %v7660_v29  ;;  %v7672_v59 = vadd.f32 %v7671_v57, %v7670_v30  ;;  %v7682_v31 = vadd.f32 %v7681_v15, %v7680_v39  ;;  %v7692_v19 = vadd.f32 %v7691_v27, %v7690_v36 }
 0x34d   :  { %v10130_v37 = vstv %s9899_s17 }
 0x377   :  { %v7614_v34 = vpop.f32.mrb[14].mxu1 }
 0x378   :  { %v7623_v60 = vmul.f32 %v7614_v34, %v3810_v6  ;;  %v7633_v35 = vmul.f32 %v7614_v34, %v3825_v4  ;;  %v7643_v61 = vmul.f32 %v7614_v34, %v10130_v37  ;;  %v7653_v38 = vmul.f32 %v7614_v34, %v10131_v11  ;;  %v8714_v62 = vpop.f32.mrb[15].mxu1 }
 0x379   :  { %v7663_v0 = vmul.f32 %v7614_v34, %v10132_v63  ;;  %v7673_v2 = vmul.f32 %v7614_v34, %v10133_v1  ;;  %v7683_v7 = vmul.f32 %v7614_v34, %v10134_v5  ;;  %v7693_v6 = vmul.f32 %v7614_v34, %v3915_v18 }
 0x37a   :  { %v7624_v4 = vadd.f32 %v7623_v60, %v7622_v28  ;;  %v7634_v8 = vadd.f32 %v7633_v35, %v7632_v32  ;;  %v7644_v9 = vadd.f32 %v7643_v61, %v7642_v58  ;;  %v7654_v10 = vadd.f32 %v7653_v38, %v7652_v33 }
 0x37b   :  { %v7664_v25 = vadd.f32 %v7663_v0, %v7662_v3  ;;  %v7674_v26 = vadd.f32 %v7673_v2, %v7672_v59  ;;  %v7684_v41 = vadd.f32 %v7683_v7, %v7682_v31  ;;  %v7694_v42 = vadd.f32 %v7693_v6, %v7692_v19 }
 0x37c   :  { %v7625_v43 = vadd.f32 %v7624_v4, %v3813_v16  ;;  %v7635_v44 = vadd.f32 %v7634_v8, %v3828_v13  ;;  %v7645_v45 = vadd.f32 %v7644_v9, %v3843_v14  ;;  %v7655_v18 = vadd.f32 %v7654_v10, %v3858_v17 }
 0x37d   :  { %v7665_v46 = vadd.f32 %v7664_v25, %v3873_v20  ;;  %v7675_v47 = vadd.f32 %v7674_v26, %v3888_v22  ;;  %v7685_v48 = vadd.f32 %v7684_v41, %v3903_v23  ;;  %v7695_v49 = vadd.f32 %v7694_v42, %v3918_v24 }
 0x37e   :  { %7627 = vst.msk [vmem:[#allocation9 + $0x40] sm:$0xff] %vm3815_vm2, %v7625_v43  ;;  %7637 = vst.msk [vmem:[#allocation9 + $0x48] sm:$0xff] %vm3815_vm2, %v7635_v44 }
 0x37f   :  { %7647 = vst.msk [vmem:[#allocation9 + $0x50] sm:$0xff] %vm3815_vm2, %v7645_v45  ;;  %7657 = vst.msk [vmem:[#allocation9 + $0x58] sm:$0xff] %vm3815_vm2, %v7655_v18 }
 0x380   :  { %7667 = vst.msk [vmem:[#allocation9 + $0x60] sm:$0xff] %vm3815_vm2, %v7665_v46  ;;  %7677 = vst.msk [vmem:[#allocation9 + $0x68] sm:$0xff] %vm3815_vm2, %v7675_v47 }
 0x381   :  { %7687 = vst.msk [vmem:[#allocation9 + $0x70] sm:$0xff] %vm3815_vm2, %v7685_v48  ;;  %7697 = vst.msk [vmem:[#allocation9 + $0x78] sm:$0xff] %vm3815_vm2, %v7695_v49 }
 0x382   :  { %9229 = shalt.err (!%p9226_p8)
}
 0x383   :  { %s10136_s29 = sld [smem:[#allocation24_spill]] }
 0x389   :  { %s9230_s30 = scalar_lea.hbm %s10136_s29, 2048 }
 0x38a   :  { %p9231_p9 = scmp.ne.s32.totalorder %s10136_s29, %s9230_s30  ;;  %p9234_p10 = scmp.lt.u32.totalorder %s9230_s30, %s10136_s29 }
 0x38c   :  { %p9236_p11 = pnand %p9234_p10, %p9231_p9 }
 0x38e   :  { %9239 = shalt.err (!%p9236_p11)
}
 0x38f   :  { %s10137_s11 = smov 8   ;;  %s10138_s12 = smov 128  }
 0x390   :  { %7709 = dma.vmem_to_hbm [thread:$0]  %s7704_s3, 2048, %s10136_s29, [#allocation4], %s10138_s12, %s10138_s12, %s10137_s11  }
 0x391   :  { %9246 = dma.done.wait [#allocation4], 2048  }
 0x392   :  { %9247 = vsyncadd [#allocation4], 4294965248 }
 0x393   :  { %7713 = vsyncpa [#allocation3], 1 }
 0x394   :  { %7714 = vsyncpa [#allocation4], 1 }
 0x395   :  { %7715 = vsyncpa [#allocation5], 1 }
 0x396   :  { %7716 = vsyncpa [#allocation8], 1 }

</bundles_post_ra>
